<compile_context>
chip_gen: v7x
topology: tpu7x:2x2x1
jax: 0.10.0
libtpu: 0.0.40
codegen_flags: <defaults>
</compile_context>

<pallas_src>
import jax
import jax.numpy as jnp
from jax.experimental import pallas as pl
from jax.experimental.pallas import tpu as pltpu

EPS = 1e-5
F32 = jnp.float32
BF16 = jnp.bfloat16


def _is_modern_tpu():
    """True on v6e/v7x (256-deep MXU, bf16 VPU path); False on v5e and older."""
    try:
        kind = jax.devices()[0].device_kind.lower()
    except Exception:
        return True
    return not any(tag in kind for tag in ("v2", "v3", "v4", "v5"))


def _bn_relu(h_f32, gamma, beta, out_dtype):
    """Training-mode BatchNorm1d + ReLU fused into one scale/shift.

    Stats: per-channel over (batch, length), two-pass biased variance in f32,
    eps=1e-5 -- matching a freshly constructed nn.BatchNorm1d in train mode.
    The affine+ReLU apply runs in `out_dtype`: bf16 on v6e/v7x (result is the
    next matmul operand directly), f32 on v5e (no bf16 VPU there).
    """
    n = h_f32.shape[0] * h_f32.shape[1]
    inv_n = 1.0 / n
    mean = jnp.sum(h_f32, axis=(0, 1), keepdims=True) * inv_n       # (1,1,C)
    centered = h_f32 - mean
    var = jnp.sum(centered * centered, axis=(0, 1), keepdims=True) * inv_n
    scale = gamma * jax.lax.rsqrt(var + EPS)                         # EUP slot
    shift = beta - mean * scale
    if out_dtype == BF16:
        return jnp.maximum(
            h_f32.astype(BF16) * scale.astype(BF16) + shift.astype(BF16), 0.0)
    return jnp.maximum(h_f32 * scale + shift, 0.0)


def make_cnn1d2_kernel(im2col_conv2, bf16_elementwise):
    elem_dtype = BF16 if bf16_elementwise else F32

    def kernel(xs_ref,
               w1_ref, g1_ref, be1_ref,
               w2_ref, g2_ref, be2_ref,
               w3_ref, g3_ref, be3_ref,
               wh_ref, bh_ref,
               out_ref):
        # ---- conv1: im2col slab (B, L1, K*Cin=12) built in the wrapper;
        # one depth-12 bf16 matmul with f32 MXU accumulation.
        h1 = jnp.einsum('blc,cf->blf', xs_ref[...], w1_ref[...],
                        preferred_element_type=F32)
        h1 = _bn_relu(h1, g1_ref[...], be1_ref[...], elem_dtype)
        # Single bf16 copy of h1, reused by every overlapping conv2 window.
        h1b = h1 if h1.dtype == BF16 else h1.astype(BF16)

        cin2 = h1b.shape[-1]
        K2 = w2_ref.shape[0] // cin2
        L2 = h1b.shape[1] - K2 + 1

        if im2col_conv2:
            # v6e/v7x: one 256-deep contraction exactly fills the 2x256^2 MXU.
            # Concat in bf16 so the lane relayout moves half the bytes.
            slab = jnp.concatenate([h1b[:, k:k + L2, :] for k in range(K2)],
                                   axis=-1)                       # (B, L2, 256)
            h2 = jnp.einsum('blc,cf->blf', slab, w2_ref[...],
                            preferred_element_type=F32)
        else:
            # v5e: 4x128^2 MXU splits a 256-deep contraction anyway, so keep
            # four per-tap depth-64 matmuls and skip the XLU-heavy lane concat.
            h2 = jnp.einsum('blc,cf->blf', h1b[:, 0:L2, :], w2_ref[0:cin2, :],
                            preferred_element_type=F32)
            for k in range(1, K2):
                h2 = h2 + jnp.einsum('blc,cf->blf', h1b[:, k:k + L2, :],
                                     w2_ref[k * cin2:(k + 1) * cin2, :],
                                     preferred_element_type=F32)
        h2 = _bn_relu(h2, g2_ref[...], be2_ref[...], elem_dtype)
        h2b = h2 if h2.dtype == BF16 else h2.astype(BF16)

        # ---- conv3: kernel_size=1 -> plain channel matmul 64 -> 32.
        h3 = jnp.einsum('blc,cf->blf', h2b, w3_ref[...],
                        preferred_element_type=F32)
        h3 = _bn_relu(h3, g3_ref[...], be3_ref[...], F32)   # f32 for pooling

        # ---- AdaptiveAvgPool1d(1) + Flatten + Linear head.
        # 32-deep x 3-wide is <0.1% MXU utilization: keep it on the VPU/XLU in
        # f32 (broadcast multiply + reduce) and fold 1/L into the scale.
        L3 = h3.shape[1]
        pooled_sum = jnp.sum(h3, axis=1)                               # (B, 32)
        prod = pooled_sum[:, :, None] * wh_ref[...][None, :, :]  # (B, 32, ncls)
        out = jnp.sum(prod, axis=1) * (1.0 / L3) + bh_ref[...]
        out_ref[...] = out.astype(out_ref.dtype)

    return kernel


def _vmem_budget_bytes(B, L, Cin, K, nfilters, nhead, nclasses):
    """Peak VMEM residents (f32 conv outputs + bf16 operands/slabs) + ~25%."""
    L1 = L - K + 1
    L2 = L1 - K + 1
    f32_elems = B * (L1 * nfilters + L2 * nfilters + L2 * nhead)
    bf16_elems = B * (L1 * K * Cin + L1 * nfilters
                      + L2 * K * nfilters + L2 * nfilters)
    w_elems = (K * Cin * nfilters + K * nfilters * nfilters
               + nfilters * nhead + nhead * nclasses)
    est = int((f32_elems * 4 + bf16_elems * 2 + w_elems * 4) * 1.25) + (4 << 20)
    return max(8 << 20, min(est, 112 << 20))


def cnn1d_2_forward(x_ncl, params, kernel_size=4):
    """x_ncl: (B, C, L) float32 (PyTorch NCL layout).  Returns (B, nclasses)."""
    w1, g1, be1, w2, g2, be2, w3, g3, be3, wh, bh = params
    B, C, L = x_ncl.shape
    K = kernel_size
    L1 = L - K + 1

    # NCL -> NLC (channels on the lane axis); build the conv1 im2col slab here
    # where x is by far the smallest tensor, and cast it to bf16 once.
    x_nlc = jnp.transpose(x_ncl, (0, 2, 1))
    x_slab = jnp.concatenate([x_nlc[:, k:k + L1, :] for k in range(K)],
                             axis=-1).astype(BF16)                 # (B, L1, K*C)

    # Pre-cast matmul weights to bf16 (accumulation stays f32 on the MXU);
    # BN affine params and the tiny head stay f32.
    args = (x_slab,
            w1.astype(BF16), g1, be1,
            w2.astype(BF16), g2, be2,
            w3.astype(BF16), g3, be3,
            wh, bh)

    modern = _is_modern_tpu()
    kernel = make_cnn1d2_kernel(im2col_conv2=modern, bf16_elementwise=modern)

    nclasses = wh.shape[-1]
    return pl.pallas_call(
        kernel,
        out_shape=jax.ShapeDtypeStruct((B, nclasses), jnp.float32),
        in_specs=[pl.BlockSpec(memory_space=pltpu.MemorySpace.VMEM)] * len(args),
        out_specs=pl.BlockSpec(memory_space=pltpu.MemorySpace.VMEM),
        compiler_params=pltpu.CompilerParams(
            vmem_limit_bytes=_vmem_budget_bytes(
                B, L, C, K, nfilters=w2.shape[-1], nhead=w3.shape[-1],
                nclasses=nclasses)),
    )(*args)


def init_params(key, nchannels=3, nfilters=64, nhead=32, kernel_size=4, nclasses=3):
    """Kernel-layout parameters (f32; matmul weights are cast to bf16 in the wrapper).

    Mapping from PyTorch:
      conv1: weight (Cout, Cin, K) -> transpose(2, 1, 0) -> reshape (K*Cin, Cout)
      conv2: weight (Cout, Cin, K) -> transpose(2, 1, 0) -> reshape (K*Cin, Cout)
      conv3: weight (Cout, Cin, 1) -> (Cin, Cout)
      head : weight (nclasses, nhead) -> transpose -> (nhead, nclasses)
    Conv biases are intentionally omitted: they cancel exactly under the
    training-mode BatchNorm that follows every conv.
    """
    ks = jax.random.split(key, 5)
    w1 = (jax.random.normal(ks[0], (kernel_size, nchannels, nfilters), F32) * 0.1
          ).reshape(kernel_size * nchannels, nfilters)
    w2 = (jax.random.normal(ks[1], (kernel_size, nfilters, nfilters), F32) * 0.05
          ).reshape(kernel_size * nfilters, nfilters)
    w3 = jax.random.normal(ks[2], (nfilters, nhead), F32) * 0.1
    # BatchNorm affine params: PyTorch default init gamma=1, beta=0.
    g1, be1 = jnp.ones((1, nfilters), F32), jnp.zeros((1, nfilters), F32)
    g2, be2 = jnp.ones((1, nfilters), F32), jnp.zeros((1, nfilters), F32)
    g3, be3 = jnp.ones((1, nhead), F32), jnp.zeros((1, nhead), F32)
    wh = jax.random.normal(ks[3], (nhead, nclasses), F32) * 0.1
    bh = jax.random.normal(ks[4], (1, nclasses), F32) * 0.01
    return (w1, g1, be1, w2, g2, be2, w3, g3, be3, wh, bh)


if __name__ == "__main__":
    key = jax.random.PRNGKey(0)
    k_x, k_p = jax.random.split(key)

    # Small shapes consistent with the module: B=2, nchannels=3, seq length=32.
    B, C, L = 2, 3, 32
    x = jax.random.normal(k_x, (B, C, L), jnp.float32)  # PyTorch NCL layout

    params = init_params(k_p)

    out = jax.block_until_ready(cnn1d_2_forward(x, params))

    assert out.shape == (B, 3), out.shape
    assert bool(jnp.all(jnp.isfinite(out)))
    print("KERNEL_OK")
</pallas_src>

<mosaic_0001>
module attributes {stable_mosaic.version = 11 : i64} {
  func.func @kernel(%arg0: memref<2x29x12xbf16, #tpu.memory_space<vmem>>, %arg1: memref<12x64xbf16, #tpu.memory_space<vmem>>, %arg2: memref<1x64xf32, #tpu.memory_space<vmem>>, %arg3: memref<1x64xf32, #tpu.memory_space<vmem>>, %arg4: memref<256x64xbf16, #tpu.memory_space<vmem>>, %arg5: memref<1x64xf32, #tpu.memory_space<vmem>>, %arg6: memref<1x64xf32, #tpu.memory_space<vmem>>, %arg7: memref<64x32xbf16, #tpu.memory_space<vmem>>, %arg8: memref<1x32xf32, #tpu.memory_space<vmem>>, %arg9: memref<1x32xf32, #tpu.memory_space<vmem>>, %arg10: memref<32x3xf32, #tpu.memory_space<vmem>>, %arg11: memref<1x3xf32, #tpu.memory_space<vmem>>, %arg12: memref<2x3xf32, #tpu.memory_space<vmem>>) attributes {dimension_semantics = [], scalar_prefetch = 0 : i64, scratch_operands = 0 : i64, tpu.core_type = #tpu.core_type<tc>} {
    %c0 = arith.constant 0 : index
    %c0_0 = arith.constant 0 : index
    %c0_1 = arith.constant 0 : index
    %0 = vector.load %arg0[%c0, %c0_0, %c0_1] : memref<2x29x12xbf16, #tpu.memory_space<vmem>>, vector<2x29x12xbf16>
    %c0_2 = arith.constant 0 : index
    %c0_3 = arith.constant 0 : index
    %1 = vector.load %arg1[%c0_2, %c0_3] : memref<12x64xbf16, #tpu.memory_space<vmem>>, vector<12x64xbf16>
    "tpu.trace_start"() <{level = 10 : i32, message = "blc,cf->blf"}> : () -> ()
    %cst = arith.constant dense<0.000000e+00> : vector<2x29x64xf32>
    %2 = tpu.matmul %0, %1, %cst {dimension_numbers = #tpu.dot_dimension_numbers<[2], [0], [0, 1], [1], [0, 0, 0, 1, 1, 1], [], []>} : vector<2x29x12xbf16>, vector<12x64xbf16>, vector<2x29x64xf32> -> vector<2x29x64xf32>
    "tpu.trace_stop"() : () -> ()
    %c0_4 = arith.constant 0 : index
    %c0_5 = arith.constant 0 : index
    %3 = vector.load %arg2[%c0_4, %c0_5] : memref<1x64xf32, #tpu.memory_space<vmem>>, vector<1x64xf32>
    %c0_6 = arith.constant 0 : index
    %c0_7 = arith.constant 0 : index
    %4 = vector.load %arg3[%c0_6, %c0_7] : memref<1x64xf32, #tpu.memory_space<vmem>>, vector<1x64xf32>
    %cst_8 = arith.constant dense<0.000000e+00> : vector<64xf32>
    %5 = vector.multi_reduction <add>, %2, %cst_8 [0, 1] : vector<2x29x64xf32> to vector<64xf32>
    %6 = vector.shape_cast %5 : vector<64xf32> to vector<1x1x64xf32>
    %cst_9 = arith.constant 0.0172413792 : f32
    %7 = vector.broadcast %cst_9 : f32 to vector<1x1x64xf32>
    %8 = arith.mulf %6, %7 : vector<1x1x64xf32>
    %9 = vector.broadcast %8 : vector<1x1x64xf32> to vector<2x29x64xf32>
    %10 = arith.subf %2, %9 : vector<2x29x64xf32>
    %11 = arith.mulf %10, %10 : vector<2x29x64xf32>
    %cst_10 = arith.constant dense<0.000000e+00> : vector<64xf32>
    %12 = vector.multi_reduction <add>, %11, %cst_10 [0, 1] : vector<2x29x64xf32> to vector<64xf32>
    %13 = vector.shape_cast %12 : vector<64xf32> to vector<1x1x64xf32>
    %cst_11 = arith.constant 0.0172413792 : f32
    %14 = vector.broadcast %cst_11 : f32 to vector<1x1x64xf32>
    %15 = arith.mulf %13, %14 : vector<1x1x64xf32>
    %cst_12 = arith.constant 9.99999974E-6 : f32
    %16 = vector.broadcast %cst_12 : f32 to vector<1x1x64xf32>
    %17 = arith.addf %15, %16 : vector<1x1x64xf32>
    %18 = math.rsqrt %17 : vector<1x1x64xf32>
    %19 = vector.shape_cast %3 : vector<1x64xf32> to vector<1x1x64xf32>
    %20 = arith.mulf %19, %18 : vector<1x1x64xf32>
    %21 = arith.mulf %8, %20 : vector<1x1x64xf32>
    %22 = vector.shape_cast %4 : vector<1x64xf32> to vector<1x1x64xf32>
    %23 = arith.subf %22, %21 : vector<1x1x64xf32>
    %24 = arith.truncf %2 : vector<2x29x64xf32> to vector<2x29x64xbf16>
    %25 = arith.truncf %20 : vector<1x1x64xf32> to vector<1x1x64xbf16>
    %26 = vector.broadcast %25 : vector<1x1x64xbf16> to vector<2x29x64xbf16>
    %27 = arith.mulf %24, %26 : vector<2x29x64xbf16>
    %28 = arith.truncf %23 : vector<1x1x64xf32> to vector<1x1x64xbf16>
    %29 = vector.broadcast %28 : vector<1x1x64xbf16> to vector<2x29x64xbf16>
    %30 = arith.addf %27, %29 : vector<2x29x64xbf16>
    %cst_13 = arith.constant 0.000000e+00 : bf16
    %31 = vector.broadcast %cst_13 : bf16 to vector<2x29x64xbf16>
    %32 = arith.maximumf %30, %31 : vector<2x29x64xbf16>
    %33 = vector.extract_strided_slice %32 {offsets = [0, 0, 0], sizes = [2, 26, 64], strides = [1, 1, 1]} : vector<2x29x64xbf16> to vector<2x26x64xbf16>
    %34 = vector.extract_strided_slice %32 {offsets = [0, 1, 0], sizes = [2, 26, 64], strides = [1, 1, 1]} : vector<2x29x64xbf16> to vector<2x26x64xbf16>
    %35 = vector.extract_strided_slice %32 {offsets = [0, 2, 0], sizes = [2, 26, 64], strides = [1, 1, 1]} : vector<2x29x64xbf16> to vector<2x26x64xbf16>
    %36 = vector.extract_strided_slice %32 {offsets = [0, 3, 0], sizes = [2, 26, 64], strides = [1, 1, 1]} : vector<2x29x64xbf16> to vector<2x26x64xbf16>
    %37 = tpu.concatenate %33, %34, %35, %36 in 2 : vector<2x26x64xbf16>, vector<2x26x64xbf16>, vector<2x26x64xbf16>, vector<2x26x64xbf16> -> vector<2x26x256xbf16>
    %c0_14 = arith.constant 0 : index
    %c0_15 = arith.constant 0 : index
    %38 = vector.load %arg4[%c0_14, %c0_15] : memref<256x64xbf16, #tpu.memory_space<vmem>>, vector<256x64xbf16>
    "tpu.trace_start"() <{level = 10 : i32, message = "blc,cf->blf"}> : () -> ()
    %cst_16 = arith.constant dense<0.000000e+00> : vector<2x26x64xf32>
    %39 = tpu.matmul %37, %38, %cst_16 {dimension_numbers = #tpu.dot_dimension_numbers<[2], [0], [0, 1], [1], [0, 0, 0, 1, 1, 1], [], []>} : vector<2x26x256xbf16>, vector<256x64xbf16>, vector<2x26x64xf32> -> vector<2x26x64xf32>
    "tpu.trace_stop"() : () -> ()
    %c0_17 = arith.constant 0 : index
    %c0_18 = arith.constant 0 : index
    %40 = vector.load %arg5[%c0_17, %c0_18] : memref<1x64xf32, #tpu.memory_space<vmem>>, vector<1x64xf32>
    %c0_19 = arith.constant 0 : index
    %c0_20 = arith.constant 0 : index
    %41 = vector.load %arg6[%c0_19, %c0_20] : memref<1x64xf32, #tpu.memory_space<vmem>>, vector<1x64xf32>
    %cst_21 = arith.constant dense<0.000000e+00> : vector<64xf32>
    %42 = vector.multi_reduction <add>, %39, %cst_21 [0, 1] : vector<2x26x64xf32> to vector<64xf32>
    %43 = vector.shape_cast %42 : vector<64xf32> to vector<1x1x64xf32>
    %cst_22 = arith.constant 0.0192307699 : f32
    %44 = vector.broadcast %cst_22 : f32 to vector<1x1x64xf32>
    %45 = arith.mulf %43, %44 : vector<1x1x64xf32>
    %46 = vector.broadcast %45 : vector<1x1x64xf32> to vector<2x26x64xf32>
    %47 = arith.subf %39, %46 : vector<2x26x64xf32>
    %48 = arith.mulf %47, %47 : vector<2x26x64xf32>
    %cst_23 = arith.constant dense<0.000000e+00> : vector<64xf32>
    %49 = vector.multi_reduction <add>, %48, %cst_23 [0, 1] : vector<2x26x64xf32> to vector<64xf32>
    %50 = vector.shape_cast %49 : vector<64xf32> to vector<1x1x64xf32>
    %cst_24 = arith.constant 0.0192307699 : f32
    %51 = vector.broadcast %cst_24 : f32 to vector<1x1x64xf32>
    %52 = arith.mulf %50, %51 : vector<1x1x64xf32>
    %cst_25 = arith.constant 9.99999974E-6 : f32
    %53 = vector.broadcast %cst_25 : f32 to vector<1x1x64xf32>
    %54 = arith.addf %52, %53 : vector<1x1x64xf32>
    %55 = math.rsqrt %54 : vector<1x1x64xf32>
    %56 = vector.shape_cast %40 : vector<1x64xf32> to vector<1x1x64xf32>
    %57 = arith.mulf %56, %55 : vector<1x1x64xf32>
    %58 = arith.mulf %45, %57 : vector<1x1x64xf32>
    %59 = vector.shape_cast %41 : vector<1x64xf32> to vector<1x1x64xf32>
    %60 = arith.subf %59, %58 : vector<1x1x64xf32>
    %61 = arith.truncf %39 : vector<2x26x64xf32> to vector<2x26x64xbf16>
    %62 = arith.truncf %57 : vector<1x1x64xf32> to vector<1x1x64xbf16>
    %63 = vector.broadcast %62 : vector<1x1x64xbf16> to vector<2x26x64xbf16>
    %64 = arith.mulf %61, %63 : vector<2x26x64xbf16>
    %65 = arith.truncf %60 : vector<1x1x64xf32> to vector<1x1x64xbf16>
    %66 = vector.broadcast %65 : vector<1x1x64xbf16> to vector<2x26x64xbf16>
    %67 = arith.addf %64, %66 : vector<2x26x64xbf16>
    %cst_26 = arith.constant 0.000000e+00 : bf16
    %68 = vector.broadcast %cst_26 : bf16 to vector<2x26x64xbf16>
    %69 = arith.maximumf %67, %68 : vector<2x26x64xbf16>
    %c0_27 = arith.constant 0 : index
    %c0_28 = arith.constant 0 : index
    %70 = vector.load %arg7[%c0_27, %c0_28] : memref<64x32xbf16, #tpu.memory_space<vmem>>, vector<64x32xbf16>
    "tpu.trace_start"() <{level = 10 : i32, message = "blc,cf->blf"}> : () -> ()
    %cst_29 = arith.constant dense<0.000000e+00> : vector<2x26x32xf32>
    %71 = tpu.matmul %69, %70, %cst_29 {dimension_numbers = #tpu.dot_dimension_numbers<[2], [0], [0, 1], [1], [0, 0, 0, 1, 1, 1], [], []>} : vector<2x26x64xbf16>, vector<64x32xbf16>, vector<2x26x32xf32> -> vector<2x26x32xf32>
    "tpu.trace_stop"() : () -> ()
    %c0_30 = arith.constant 0 : index
    %c0_31 = arith.constant 0 : index
    %72 = vector.load %arg8[%c0_30, %c0_31] : memref<1x32xf32, #tpu.memory_space<vmem>>, vector<1x32xf32>
    %c0_32 = arith.constant 0 : index
    %c0_33 = arith.constant 0 : index
    %73 = vector.load %arg9[%c0_32, %c0_33] : memref<1x32xf32, #tpu.memory_space<vmem>>, vector<1x32xf32>
    %cst_34 = arith.constant dense<0.000000e+00> : vector<32xf32>
    %74 = vector.multi_reduction <add>, %71, %cst_34 [0, 1] : vector<2x26x32xf32> to vector<32xf32>
    %75 = vector.shape_cast %74 : vector<32xf32> to vector<1x1x32xf32>
    %cst_35 = arith.constant 0.0192307699 : f32
    %76 = vector.broadcast %cst_35 : f32 to vector<1x1x32xf32>
    %77 = arith.mulf %75, %76 : vector<1x1x32xf32>
    %78 = vector.broadcast %77 : vector<1x1x32xf32> to vector<2x26x32xf32>
    %79 = arith.subf %71, %78 : vector<2x26x32xf32>
    %80 = arith.mulf %79, %79 : vector<2x26x32xf32>
    %cst_36 = arith.constant dense<0.000000e+00> : vector<32xf32>
    %81 = vector.multi_reduction <add>, %80, %cst_36 [0, 1] : vector<2x26x32xf32> to vector<32xf32>
    %82 = vector.shape_cast %81 : vector<32xf32> to vector<1x1x32xf32>
    %cst_37 = arith.constant 0.0192307699 : f32
    %83 = vector.broadcast %cst_37 : f32 to vector<1x1x32xf32>
    %84 = arith.mulf %82, %83 : vector<1x1x32xf32>
    %cst_38 = arith.constant 9.99999974E-6 : f32
    %85 = vector.broadcast %cst_38 : f32 to vector<1x1x32xf32>
    %86 = arith.addf %84, %85 : vector<1x1x32xf32>
    %87 = math.rsqrt %86 : vector<1x1x32xf32>
    %88 = vector.shape_cast %72 : vector<1x32xf32> to vector<1x1x32xf32>
    %89 = arith.mulf %88, %87 : vector<1x1x32xf32>
    %90 = arith.mulf %77, %89 : vector<1x1x32xf32>
    %91 = vector.shape_cast %73 : vector<1x32xf32> to vector<1x1x32xf32>
    %92 = arith.subf %91, %90 : vector<1x1x32xf32>
    %93 = vector.broadcast %89 : vector<1x1x32xf32> to vector<2x26x32xf32>
    %94 = arith.mulf %71, %93 : vector<2x26x32xf32>
    %95 = vector.broadcast %92 : vector<1x1x32xf32> to vector<2x26x32xf32>
    %96 = arith.addf %94, %95 : vector<2x26x32xf32>
    %cst_39 = arith.constant 0.000000e+00 : f32
    %97 = vector.broadcast %cst_39 : f32 to vector<2x26x32xf32>
    %98 = arith.maximumf %96, %97 : vector<2x26x32xf32>
    %cst_40 = arith.constant dense<0.000000e+00> : vector<2x32xf32>
    %99 = vector.multi_reduction <add>, %98, %cst_40 [1] : vector<2x26x32xf32> to vector<2x32xf32>
    %100 = vector.shape_cast %99 : vector<2x32xf32> to vector<2x32x1xf32>
    %c0_41 = arith.constant 0 : index
    %c0_42 = arith.constant 0 : index
    %101 = vector.load %arg10[%c0_41, %c0_42] : memref<32x3xf32, #tpu.memory_space<vmem>>, vector<32x3xf32>
    %102 = vector.shape_cast %101 : vector<32x3xf32> to vector<1x32x3xf32>
    %103 = vector.broadcast %100 : vector<2x32x1xf32> to vector<2x32x3xf32>
    %104 = vector.broadcast %102 : vector<1x32x3xf32> to vector<2x32x3xf32>
    %105 = arith.mulf %103, %104 : vector<2x32x3xf32>
    %cst_43 = arith.constant dense<0.000000e+00> : vector<2x3xf32>
    %106 = vector.multi_reduction <add>, %105, %cst_43 [1] : vector<2x32x3xf32> to vector<2x3xf32>
    %cst_44 = arith.constant 0.0384615399 : f32
    %107 = vector.broadcast %cst_44 : f32 to vector<2x3xf32>
    %108 = arith.mulf %106, %107 : vector<2x3xf32>
    %c0_45 = arith.constant 0 : index
    %c0_46 = arith.constant 0 : index
    %109 = vector.load %arg11[%c0_45, %c0_46] : memref<1x3xf32, #tpu.memory_space<vmem>>, vector<1x3xf32>
    %110 = vector.broadcast %109 : vector<1x3xf32> to vector<2x3xf32>
    %111 = arith.addf %108, %110 : vector<2x3xf32>
    %c0_47 = arith.constant 0 : index
    %c0_48 = arith.constant 0 : index
    %112 = vector.load %arg12[%c0_47, %c0_48] : memref<2x3xf32, #tpu.memory_space<vmem>>, vector<2x3xf32>
    tpu.vector_store %arg12[%c0_47, %c0_48], %111 {strides = array<i32>} : memref<2x3xf32, #tpu.memory_space<vmem>>, vector<2x3xf32>,
    return
  }
}

</mosaic_0001>

<bundles_post_ra>
// kernel: tpu_custom_call.1
= control target key start
LH: loop header
LB: loop body
LE: loop exit
PB: predicated region body
PF: predicated region fallthrough
CT: control target
= control target key end

     0   :  { %v72_v1 = vlaneseq  ;;  %vm542_vm0 = vcmask 1045504   ;;  %v5003_v7 = vmov 1966171168   ;;  %vm529_vm1 = vcmask 97280   ;;  %s6675_s0 = inlined_call_operand.vmem [shape: bf16[2,29,12], index: 0, kind: input, shape index: {}]   ;;  %s6676_s1 = inlined_call_operand.vmem [shape: bf16[12,64], index: 1, kind: input, shape index: {}]   ;;  %s6677_s2 = inlined_call_operand.vmem [shape: f32[1,64], index: 2, kind: input, shape index: {}]   ;;  %s6678_s3 = inlined_call_operand.vmem [shape: f32[1,64], index: 3, kind: input, shape index: {}]   ;;  %s6679_s4 = inlined_call_operand.vmem [shape: bf16[256,64], index: 4, kind: input, shape index: {}]   ;;  %s6680_s5 = inlined_call_operand.vmem [shape: f32[1,64], index: 5, kind: input, shape index: {}]   ;;  %s6681_s6 = inlined_call_operand.vmem [shape: f32[1,64], index: 6, kind: input, shape index: {}]   ;;  %s6682_s7 = inlined_call_operand.vmem [shape: bf16[64,32], index: 7, kind: input, shape index: {}]   ;;  %s6683_s8 = inlined_call_operand.vmem [shape: f32[1,32], index: 8, kind: input, shape index: {}]   ;;  %s6684_s9 = inlined_call_operand.vmem [shape: f32[1,32], index: 9, kind: input, shape index: {}]   ;;  %s6685_s10 = inlined_call_operand.vmem [shape: f32[32,3], index: 10, kind: input, shape index: {}]   ;;  %s6686_s11 = inlined_call_operand.vmem [shape: f32[1,3], index: 11, kind: input, shape index: {}]   ;;  %s6687_s12 = inlined_call_operand.hbm [shape: f32[2,3], index: 12, kind: output, shape index: {}]  }
   0x1   :  { %v4952_v0 = vld [vmem:[%s6676_s1] sm:$0x3f]   ;;  %v4800_v6 = vld.sshfl [vmem:[%s6675_s0 + $0x8] sm:$0x33 pattern:$0x75316420]  ;;  %v70_v8 = vunpack.c.l.s4 %v5003_v7 }
   0x2   :  { %v4798_v2 = vld.sshfl [vmem:[%s6675_s0] sm:$0x33 pattern:$0x75316420]  ;;  %4946 = vmatprep.subr.msk.bf16.mxu0 %vm542_vm0, %v4952_v0  ;;  %v544_v3 = vsel %vm542_vm0, %v4952_v0, 0  ;;  %v5082_v5 = vshrl.u32 %v72_v1, 7  ;;  %v116_v15 = vcombine.high %v4800_v6, %v4800_v6 }
   0x3   :  { %v4799_v4 = vld.sshfl [vmem:[%s6675_s0 + $0x4] sm:$0x33 pattern:$0x75316420]  ;;  %4921 = vmatpush3.bf16.msra.mxu0 %v544_v3  ;;  %v68_v11 = vcombine.high %v4798_v2, %v4798_v2  ;;  %v71_v12 = vunpack.c.0.s8 %v70_v8 }
   0x4   :  { %6726 = vst [vmem:[#allocation5_spill] sm:$0xff] %v5082_v5  ;;  %v4801_v9 = vld.sshfl [vmem:[%s6675_s0 + $0xc] sm:$0x13 pattern:$0x75316420]  ;;  %v92_v13 = vcombine.high %v4799_v4, %v4799_v4 }
   0x5   :  { %v4802_v10 = vld.sshfl [vmem:[%s6675_s0 + $0x10] sm:$0x33 pattern:$0x75316420]  ;;  %v140_v16 = vcombine.high %v4801_v9, %v4801_v9  ;;  %v5100_v18 = vsub.s32 %v71_v12, %v5082_v5 }
   0x6   :  { %v4803_v14 = vld.sshfl [vmem:[%s6675_s0 + $0x14] sm:$0x33 pattern:$0x75316420]  ;;  %v163_v20 = vcombine.high %v4802_v10, %v4802_v10 }
   0x7   :  { %v4804_v17 = vld.sshfl [vmem:[%s6675_s0 + $0x18] sm:$0x33 pattern:$0x75316420]  ;;  %6727 = vst [vmem:[#allocation6_spill] sm:$0xff] %v5100_v18  ;;  %v187_v21 = vcombine.high %v4803_v14, %v4803_v14  ;;  %v75_v24 = vrot.slane %v4798_v2, %v5100_v18  ;;  %v82_v25 = vrot.slane %v68_v11, %v5100_v18  ;;  %v99_v26 = vrot.slane %v4799_v4, %v5100_v18 }
   0x8   :  { %v5105_v19 = vld.sshfl [vmem:[%s6675_s0 + $0x1c] sm:$0x13 pattern:$0x75316420]  ;;  %v211_v22 = vcombine.high %v4804_v17, %v4804_v17  ;;  %v106_v27 = vrot.slane %v92_v13, %v5100_v18  ;;  %v123_v28 = vrot.slane %v4800_v6, %v5100_v18  ;;  %v130_v29 = vrot.slane %v116_v15, %v5100_v18 }
   0x9   :  { %v235_v23 = vcombine.high %v5105_v19, %v5105_v19  ;;  %v147_v30 = vrot.slane %v4801_v9, %v5100_v18  ;;  %v154_v31 = vrot.slane %v140_v16, %v5100_v18  ;;  %v338_v32 = vcombine.low %v75_v24, %v82_v25 }
   0xa   :  { %v4821_v33 = vcombine.high %v75_v24, %v82_v25  ;;  %v340_v34 = vcombine.low %v99_v26, %v106_v27  ;;  %v4822_v35 = vcombine.high %v99_v26, %v106_v27  ;;  %v170_v37 = vrot.slane %v4802_v10, %v5100_v18 }
   0xb   :  { %v155_v36 = vcombine.high %v147_v30, %v147_v30  ;;  %v177_v38 = vrot.slane %v163_v20, %v5100_v18  ;;  %v387_v39 = vcombine.low %v123_v28, %v130_v29  ;;  %v348_v40 = vrot.slane %v338_v32, %v5100_v18 }
   0xc   :  { %v355_v41 = vrot.slane %v4821_v33, %v5100_v18  ;;  %v362_v42 = vrot.slane %v340_v34, %v5100_v18  ;;  %v369_v43 = vrot.slane %v4822_v35, %v5100_v18  ;;  %v281_v44 = vunpack.i.h.s16 %v170_v37 }
   0xd   :  { %v4806_v45 = vpack.i.b16 %v170_v37, %v155_v36  ;;  %v4823_v46 = vcombine.high %v123_v28, %v130_v29  ;;  %v389_v47 = vcombine.low %v147_v30, %v154_v31  ;;  %v397_v50 = vrot.slane %v387_v39, %v5100_v18 }
   0xe   :  { %v370_v48 = vcombine.low %v348_v40, %v355_v41  ;;  %v371_v49 = vcombine.low %v362_v42, %v369_v43  ;;  %v178_v51 = vcombine.high %v170_v37, %v170_v37  ;;  %v4807_v52 = vpack.i.b16 %v177_v38, %v281_v44 }
   0xf   :  { %v404_v53 = vrot.slane %v4823_v46, %v5100_v18  ;;  %v411_v54 = vrot.slane %v389_v47, %v5100_v18  ;;  %v179_v55 = vcombine.high %v177_v38, %v177_v38  ;;  %v194_v58 = vrot.slane %v4803_v14, %v5100_v18 }
  0x10   :  { %v378_v56 = vrot.slane %v370_v48, %v5100_v18  ;;  %v385_v57 = vrot.slane %v371_v49, %v5100_v18  ;;  %v201_v59 = vrot.slane %v187_v21, %v5100_v18  ;;  %v390_v60 = vcombine.low %v4806_v45, %v4807_v52 }
  0x11   :  { %v419_v61 = vcombine.low %v397_v50, %v404_v53  ;;  %v218_v62 = vrot.slane %v4804_v17, %v5100_v18  ;;  %v225_v63 = vrot.slane %v211_v22, %v5100_v18  ;;  %v202_v1 = vcombine.high %v194_v58, %v194_v58 }
  0x12   :  { %v386_v0 = vcombine.low %v378_v56, %v385_v57  ;;  %v203_v2 = vcombine.high %v201_v59, %v201_v59  ;;  %v283_v3 = vunpack.i.h.s16 %v177_v38 }
  0x13   :  { %17 = vsyncpa [#allocation3], 0  ;;  %v418_v4 = vrot.slane %v390_v60, %v5100_v18  ;;  %v427_v6 = vrot.slane %v419_v61, %v5100_v18  ;;  %v285_v7 = vunpack.i.h.s16 %v178_v51  ;;  %v287_v8 = vunpack.i.h.s16 %v179_v55  ;;  %s5005_s18 = smov 64  }
  0x14   :  { %4922 = vmatprep.mubr.msk.bf16.mxu0 %vm529_vm1, %v386_v0  ;;  %v289_v9 = vunpack.i.h.s16 %v194_v58  ;;  %v291_v10 = vunpack.i.h.s16 %v201_v59  ;;  %v293_v11 = vunpack.i.h.s16 %v202_v1  ;;  %v295_v12 = vunpack.i.h.s16 %v203_v2 }
  0x15   :  { %v420_v13 = vcombine.low %v411_v54, %v418_v4  ;;  %v297_v14 = vunpack.i.h.s16 %v218_v62  ;;  %v4808_v15 = vpack.i.b16 %v178_v51, %v283_v3  ;;  %v4809_v16 = vpack.i.b16 %v179_v55, %v285_v7 }
  0x16   :  { %v4810_v17 = vpack.i.b16 %v194_v58, %v287_v8  ;;  %v4811_v20 = vpack.i.b16 %v201_v59, %v289_v9  ;;  %v4812_v21 = vpack.i.b16 %v202_v1, %v291_v10  ;;  %v4813_v22 = vpack.i.b16 %v203_v2, %v293_v11 }
  0x17   :  { %v434_v24 = vrot.slane %v420_v13, %v5100_v18  ;;  %v4814_v25 = vpack.i.b16 %v218_v62, %v295_v12  ;;  %v4815_v26 = vpack.i.b16 %v225_v63, %v297_v14  ;;  %v436_v27 = vcombine.low %v4808_v15, %v4809_v16 }
  0x18   :  { %v437_v28 = vcombine.low %v4810_v17, %v4811_v20  ;;  %v438_v29 = vcombine.low %v4812_v21, %v4813_v22  ;;  %v226_v30 = vcombine.high %v218_v62, %v218_v62  ;;  %v227_v31 = vcombine.high %v225_v63, %v225_v63 }
  0x19   :  { %v435_v32 = vcombine.low %v427_v6, %v434_v24  ;;  %v439_v33 = vcombine.low %v4814_v25, %v4815_v26  ;;  %v446_v34 = vrot.slane %v436_v27, %v5100_v18  ;;  %v242_v35 = vrot.slane %v5105_v19, %v5100_v18 }
  0x1a   :  { %v453_v36 = vrot.slane %v437_v28, %v5100_v18  ;;  %v460_v37 = vrot.slane %v438_v29, %v5100_v18  ;;  %v249_v38 = vrot.slane %v235_v23, %v5100_v18  ;;  %v299_v39 = vunpack.i.h.s16 %v225_v63 }
  0x1b   :  { %4923 = vmatmul.mubr.msk.bf16.vlgmr.msra.gmra.mrb[0].mxu0 %vm529_vm1, %v435_v32  ;;  %v467_v40 = vrot.slane %v439_v33, %v5100_v18  ;;  %v250_v41 = vcombine.high %v242_v35, %v242_v35  ;;  %v301_v42 = vunpack.i.h.s16 %v226_v30  ;;  %v303_v43 = vunpack.i.h.s16 %v227_v31 }
  0x1c   :  { %v468_v44 = vcombine.low %v446_v34, %v453_v36  ;;  %v305_v45 = vunpack.i.h.s16 %v242_v35  ;;  %v307_v46 = vunpack.i.h.s16 %v249_v38  ;;  %v4816_v47 = vpack.i.b16 %v226_v30, %v299_v39 }
  0x1d   :  { %v469_v48 = vcombine.low %v460_v37, %v467_v40  ;;  %v4817_v49 = vpack.i.b16 %v227_v31, %v301_v42  ;;  %v4818_v50 = vpack.i.b16 %v242_v35, %v303_v43  ;;  %vm1424_vm2 = vcmask 523264  }
  0x1e   :  { %v476_v51 = vrot.slane %v468_v44, %v5100_v18  ;;  %v4819_v52 = vpack.i.b16 %v249_v38, %v305_v45  ;;  %v4820_v19 = vpack.i.b16 %v250_v41, %v307_v46  ;;  %vm1430_vm3 = vcmask 520192  }
  0x1f   :  { %v483_v23 = vrot.slane %v469_v48, %v5100_v18  ;;  %v485_v53 = vcombine.low %v4816_v47, %v4817_v49  ;;  %vm2119_vm4 = vsmask.f32 7424  ;;  %vm2169_vm5 = vsmask.f32 6400 }
  0x20   :  { %v486_v54 = vcombine.low %v4818_v50, %v4819_v52  ;;  %v507_v55 = vrot.slane %v4820_v19, %v5100_v18  ;;  %vm2162_vm6 = vcmask 1046528   ;;  %vm3095_vm7 = vcmask 517120  }
  0x21   :  { %v484_v56 = vcombine.low %v476_v51, %v483_v23  ;;  %v493_v57 = vrot.slane %v485_v53, %v5100_v18  ;;  %vm4115_vm8 = vcmask 261120   ;;  %vm4121_vm9 = vcmask 254976  }
  0x22   :  { %v500_v58 = vrot.slane %v486_v54, %v5100_v18  ;;  %v522_v60 = vrot.slane %v507_v55, %v5100_v18  ;;  %vm4738_vm10 = vcmask 23552   ;;  %vm4779_vm11 = vcmask 1041409  }
  0x23   :  { %4926 = vmatprep.mubr.msk.bf16.mxu0 %vm529_vm1, %v484_v56  ;;  %vm4782_vm12 = vcmask 17408  }
  0x24   :  { %v508_v59 = vcombine.low %v493_v57, %v500_v58 }
  0x26   :  { %v515_v61 = vrot.slane %v508_v59, %v5100_v18 }
  0x28   :  { %v523_v62 = vcombine.low %v515_v61, %v522_v60 }
  0x2a   :  { %4927 = vmatmul.mubr.msk.bf16.gmra.mrb[4].mxu0 %vm529_vm1, %v523_v62 }
  0xee   :  { %v4924_v63 = vpop.f32.mrb[0].mxu0 }
  0xef   :  { %v717_v0 = vcombine.high %v4924_v63, %v4924_v63  ;;  %v724_v1 = vrot.slane %v4924_v63, %v5100_v18  ;;  %v580_v2 = vpop.f32.mrb[1].mxu0 }
  0xf0   :  { %v619_v3 = vcombine.high %v580_v2, %v580_v2  ;;  %v626_v4 = vrot.slane %v580_v2, %v5100_v18  ;;  %v4925_v6 = vpop.f32.mrb[2].mxu0 }
  0xf1   :  { %v731_v7 = vrot.slane %v717_v0, %v5100_v18  ;;  %v732_v8 = vcombine.high %v724_v1, %v724_v1  ;;  %v583_v9 = vpop.f32.mrb[3].mxu0  ;;  %v5161_v13 = vrot.slane %v724_v1, %v5100_v18  ;;  %v766_v26 = vcombine.high %v4925_v6, %v4925_v6 }
  0xf2   :  { %v633_v10 = vrot.slane %v619_v3, %v5100_v18  ;;  %v634_v11 = vcombine.high %v626_v4, %v626_v4  ;;  %v5180_v24 = vrot.slane %v626_v4, %v5100_v18  ;;  %v773_v30 = vrot.slane %v4925_v6, %v5100_v18 }
  0xf3   :  { %v733_v12 = vcombine.high %v731_v7, %v731_v7  ;;  %v5164_v14 = vrot.slane %v732_v8, %v5100_v18  ;;  %v5170_v17 = vrot.slane %v731_v7, %v5100_v18  ;;  %v780_v39 = vrot.slane %v766_v26, %v5100_v18 }
  0xf4   :  { %v635_v15 = vcombine.high %v633_v10, %v633_v10  ;;  %v5167_v16 = vrot.slane %v634_v11, %v5100_v18  ;;  %v5190_v29 = vrot.slane %v633_v10, %v5100_v18  ;;  %v781_v42 = vcombine.high %v773_v30, %v773_v30 }
  0xf5   :  { %v5173_v20 = vrot.slane %v733_v12, %v5100_v18  ;;  %v1142_v21 = vcombine.low %v5161_v13, %v5164_v14  ;;  %v4833_v22 = vcombine.high %v5161_v13, %v5164_v14  ;;  %v5214_v49 = vrot.slane %v773_v30, %v5100_v18 }
  0xf6   :  { %v5183_v25 = vrot.slane %v635_v15, %v5100_v18  ;;  %v1044_v33 = vcombine.low %v5180_v24, %v5167_v16  ;;  %v4829_v34 = vcombine.high %v5180_v24, %v5167_v16  ;;  %v5211_v47 = vrot.slane %v781_v42, %v5100_v18 }
  0xf7   :  { %v1144_v27 = vcombine.low %v5170_v17, %v5173_v20  ;;  %v4834_v28 = vcombine.high %v5170_v17, %v5173_v20  ;;  %v1152_v31 = vrot.slane %v1142_v21, %v5100_v18  ;;  %v1159_v32 = vrot.slane %v4833_v22, %v5100_v18 }
  0xf8   :  { %v1046_v37 = vcombine.low %v5190_v29, %v5183_v25  ;;  %v4830_v38 = vcombine.high %v5190_v29, %v5183_v25  ;;  %v1054_v40 = vrot.slane %v1044_v33, %v5100_v18  ;;  %v1061_v41 = vrot.slane %v4829_v34, %v5100_v18 }
  0xf9   :  { %v1166_v35 = vrot.slane %v1144_v27, %v5100_v18  ;;  %v1173_v36 = vrot.slane %v4834_v28, %v5100_v18  ;;  %v1174_v43 = vcombine.low %v1152_v31, %v1159_v32  ;;  %v5217_v50 = vrot.slane %v780_v39, %v5100_v18 }
  0xfa   :  { %v1068_v45 = vrot.slane %v1046_v37, %v5100_v18  ;;  %v1075_v46 = vrot.slane %v4830_v38, %v5100_v18  ;;  %v668_v51 = vcombine.high %v583_v9, %v583_v9  ;;  %v1076_v19 = vcombine.low %v1054_v40, %v1061_v41 }
  0xfb   :  { %v1175_v44 = vcombine.low %v1166_v35, %v1173_v36  ;;  %v782_v23 = vcombine.high %v780_v39, %v780_v39  ;;  %v1191_v54 = vcombine.low %v5214_v49, %v5211_v47  ;;  %v4835_v55 = vcombine.high %v5214_v49, %v5211_v47 }
  0xfc   :  { %v675_v56 = vrot.slane %v583_v9, %v5100_v18  ;;  %v1182_v58 = vrot.slane %v1174_v43, %v5100_v18  ;;  %v1077_v60 = vcombine.low %v1068_v45, %v1075_v46  ;;  %v682_v61 = vrot.slane %v668_v51, %v5100_v18 }
  0xfd   :  { %v4928_v48 = vpop.f32.mrb[4].mxu0  ;;  %v1189_v59 = vrot.slane %v1175_v44, %v5100_v18  ;;  %v1199_v62 = vrot.slane %v1191_v54, %v5100_v18  ;;  %v1206_v63 = vrot.slane %v4835_v55, %v5100_v18  ;;  %v1213_v0 = vrot.slane %v5217_v50, %v5100_v18 }
  0xfe   :  { %v596_v52 = vpop.f32.mrb[5].mxu0  ;;  %v683_v1 = vcombine.high %v675_v56, %v675_v56  ;;  %v1084_v2 = vrot.slane %v1076_v19, %v5100_v18  ;;  %v5237_v3 = vrot.slane %v782_v23, %v5100_v18  ;;  %v684_v4 = vcombine.high %v682_v61, %v682_v61 }
  0xff   :  { %v5219_v53 = vpop.f32.mrb[6].mxu0  ;;  %v5240_v6 = vrot.slane %v675_v56, %v5100_v18  ;;  %v1214_v7 = vcombine.low %v1199_v62, %v1206_v63  ;;  %v913_v9 = vcombine.high %v4928_v48, %v4928_v48  ;;  %v920_v10 = vrot.slane %v4928_v48, %v5100_v18 }
 0x100   :  { %v5226_v57 = vpop.f32.mrb[7].mxu0  ;;  %v5243_v8 = vrot.slane %v683_v1, %v5100_v18  ;;  %v1091_v11 = vrot.slane %v1077_v60, %v5100_v18  ;;  %v5247_v12 = vcombine.low %v1182_v58, %v1189_v59  ;;  %v5250_v15 = vrot.slane %v682_v61, %v5100_v18 }
 0x101   :  { %v5253_v21 = vrot.slane %v684_v4, %v5100_v18  ;;  %v1221_v22 = vrot.slane %v1214_v7, %v5100_v18  ;;  %v1228_v26 = vrot.slane %v1213_v0, %v5100_v18  ;;  %v5263_v30 = vcombine.high %v5217_v50, %v5217_v50 }
 0x102   :  { %6728 = vst [vmem:[#allocation7_spill] sm:$0xff] %v5247_v12  ;;  %v1093_v27 = vcombine.low %v5240_v6, %v5243_v8  ;;  %v4831_v28 = vcombine.high %v5240_v6, %v5243_v8  ;;  %v927_v33 = vrot.slane %v913_v9, %v5100_v18  ;;  %v928_v37 = vcombine.high %v920_v10, %v920_v10 }
 0x103   :  { %v1095_v31 = vcombine.low %v5250_v15, %v5253_v21  ;;  %v4832_v32 = vcombine.high %v5250_v15, %v5253_v21  ;;  %v5270_v34 = vcombine.low %v1221_v22, %v1228_v26  ;;  %v5274_v38 = vcombine.low %v1084_v2, %v1091_v11 }
 0x104   :  { %v1103_v35 = vrot.slane %v1093_v27, %v5100_v18  ;;  %v1110_v36 = vrot.slane %v4831_v28, %v5100_v18  ;;  %v929_v43 = vcombine.high %v927_v33, %v927_v33  ;;  %v5281_v45 = vrot.slane %v920_v10, %v5100_v18 }
 0x105   :  { %6729 = vst [vmem:[#allocation8_spill] sm:$0xff] %v5270_v34  ;;  %6730 = vst [vmem:[#allocation9_spill] sm:$0xff] %v5274_v38  ;;  %v1117_v39 = vrot.slane %v1095_v31, %v5100_v18  ;;  %v1124_v40 = vrot.slane %v4832_v32, %v5100_v18  ;;  %v5284_v46 = vrot.slane %v927_v33, %v5100_v18  ;;  %v1428_v19 = vsel %vm1424_vm2, %v5247_v12, 0.0 }
 0x106   :  { %v1125_v42 = vcombine.low %v1103_v35, %v1110_v36  ;;  %6731 = vst [vmem:[#allocation10_spill] sm:$0xff] %v5281_v45  ;;  %v5287_v48 = vrot.slane %v928_v37, %v5100_v18  ;;  %v1230_v51 = vcombine.low %v5237_v3, %v5263_v30  ;;  %v815_v23 = vcombine.high %v596_v52, %v596_v52 }
 0x107   :  { %v1126_v44 = vcombine.low %v1117_v39, %v1124_v40  ;;  %6732 = vst [vmem:[#allocation11_spill] sm:$0xff] %v5284_v46  ;;  %v822_v54 = vrot.slane %v596_v52, %v5100_v18  ;;  %v1425_v55 = vsel %vm1424_vm2, %v5274_v38, 0.0  ;;  %v5300_v59 = vcombine.high %v5237_v3, %v5237_v3 }
 0x108   :  { %6733 = vst [vmem:[#allocation12_spill] sm:$0xff] %v5287_v48  ;;  %v1133_v56 = vrot.slane %v1125_v42, %v5100_v18  ;;  %v5303_v60 = vrot.slane %v929_v43, %v5100_v18  ;;  %v829_v61 = vrot.slane %v815_v23, %v5100_v18  ;;  %v5313_v0 = vcombine.high %v5281_v45, %v5281_v45 }
 0x109   :  { %v1140_v58 = vrot.slane %v1126_v44, %v5100_v18  ;;  %v830_v62 = vcombine.high %v822_v54, %v822_v54  ;;  %v5307_v63 = vrot.slane %v822_v54, %v5100_v18  ;;  %v5317_v1 = vcombine.high %v5284_v46, %v5284_v46 }
 0x10a   :  { %6734 = vst [vmem:[#allocation13_spill] sm:$0xff] %v5303_v60  ;;  %6736 = vst [vmem:[#allocation15_spill] sm:$0xff] %v5313_v0  ;;  %v5321_v2 = vcombine.high %v5287_v48, %v5287_v48  ;;  %v831_v4 = vcombine.high %v829_v61, %v829_v61  ;;  %v5324_v7 = vrot.slane %v829_v61, %v5100_v18  ;;  %v1431_v44 = vsel %vm1430_vm3, %v5270_v34, 0.0 }
 0x10b   :  { %v5309_v52 = vcombine.low %v1133_v56, %v1140_v58  ;;  %6737 = vst [vmem:[#allocation16_spill] sm:$0xff] %v5317_v1  ;;  %v5327_v9 = vrot.slane %v830_v62, %v5100_v18  ;;  %v5331_v10 = vcombine.high %v5307_v63, %v5307_v63  ;;  %v1231_v22 = vcombine.low %v5300_v59, %v5307_v63 }
 0x10c   :  { %6738 = vst [vmem:[#allocation17_spill] sm:$0xff] %v5321_v2  ;;  %v1240_v26 = vrot.slane %v1230_v51, %v5100_v18  ;;  %v968_v27 = vrot.slane %v5219_v53, %v5100_v18  ;;  %v5341_v31 = vrot.slane %v831_v4, %v5100_v18  ;;  %v5349_v33 = vcombine.high %v5303_v60, %v5303_v60 }
 0x10d   :  { %6735 = vst [vmem:[#allocation14_spill] sm:$0xff] %v5309_v52  ;;  %v1426_v11 = vsel %vm1424_vm2, %v5309_v52, 0.0  ;;  %v5345_v32 = vcombine.high %v5327_v9, %v5327_v9  ;;  %v5353_v35 = vcombine.high %v5324_v7, %v5324_v7  ;;  %v1232_v36 = vcombine.low %v5327_v9, %v5331_v10 }
 0x10e   :  { %v1427_v28 = vadd.f32 %v1426_v11, %v1425_v55  ;;  %6739 = vst [vmem:[#allocation18_spill] sm:$0xff] %v5349_v33  ;;  %v1247_v53 = vrot.slane %v1231_v22, %v5100_v18  ;;  %v969_v37 = vcombine.high %v968_v27, %v968_v27  ;;  %v1377_v39 = vcombine.low %v5303_v60, %v5317_v1 }
 0x10f   :  { %v1233_v40 = vcombine.low %v5345_v32, %v5324_v7  ;;  %v5363_v43 = vrot.slane %v968_v27, %v5100_v18  ;;  %v1330_v51 = vcombine.low %v5287_v48, %v5313_v0  ;;  %v1254_v55 = vrot.slane %v1232_v36, %v5100_v18 }
 0x110   :  { %v1429_v42 = vadd.f32 %v1428_v19, %v1427_v28  ;;  %v1262_v23 = vcombine.low %v1240_v26, %v1247_v53  ;;  %v5370_v54 = vrot.slane %v969_v37, %v5100_v18  ;;  %v1331_v61 = vcombine.low %v5321_v2, %v5284_v46 }
 0x111   :  { %6740 = vst [vmem:[#allocation19_spill] sm:$0xff] %v5363_v43  ;;  %v1261_v56 = vrot.slane %v1233_v40, %v5100_v18  ;;  %v1378_v19 = vcombine.low %v5349_v33, %v5363_v43  ;;  %v1279_v62 = vcombine.low %v5341_v31, %v5353_v35  ;;  %v864_v11 = vcombine.high %v5226_v57, %v5226_v57 }
 0x112   :  { %6741 = vst [vmem:[#allocation20_spill] sm:$0xff] %v5370_v54  ;;  %v1432_v58 = vadd.f32 %v1431_v44, %v1429_v42  ;;  %v1399_v4 = vrot.slane %v5370_v54, %v5100_v18  ;;  %v1385_v26 = vrot.slane %v1377_v39, %v5100_v18  ;;  %v871_v28 = vrot.slane %v5226_v57, %v5100_v18 }
 0x113   :  { %v1263_v22 = vcombine.low %v1254_v55, %v1261_v56  ;;  %v1392_v27 = vrot.slane %v1378_v19, %v5100_v18  ;;  %v1270_v36 = vrot.slane %v1262_v23, %v5100_v18  ;;  %v5391_v53 = vcombine.high %v5341_v31, %v5341_v31 }
 0x114   :  { %v878_v37 = vrot.slane %v864_v11, %v5100_v18  ;;  %v879_v39 = vcombine.high %v871_v28, %v871_v28  ;;  %v5398_v55 = vrot.slane %v871_v28, %v5100_v18  ;;  %v1359_v57 = vrot.slane %v1331_v61, %v5100_v18 }
 0x115   :  { %v1277_v42 = vrot.slane %v1263_v22, %v5100_v18  ;;  %v1400_v44 = vcombine.low %v1385_v26, %v1392_v27  ;;  %v1414_v23 = vrot.slane %v1399_v4, %v5100_v18  ;;  %v1289_v27 = vrot.slane %v1279_v62, %v5100_v18 }
 0x116   :  { %v880_v56 = vcombine.high %v878_v37, %v878_v37  ;;  %v5403_v19 = vrot.slane %v878_v37, %v5100_v18  ;;  %v5409_v40 = vrot.slane %v879_v39, %v5100_v18  ;;  %v5413_v22 = vcombine.high %v5398_v55, %v5398_v55 }
 0x117   :  { %v5405_v41 = vcombine.low %v1270_v36, %v1277_v42  ;;  %v1407_v11 = vrot.slane %v1400_v44, %v5100_v18  ;;  %v1280_v4 = vcombine.low %v5391_v53, %v5398_v55 }
 0x118   :  { %v5416_v26 = vrot.slane %v880_v56, %v5100_v18  ;;  %v5420_v61 = vcombine.high %v5403_v19, %v5403_v19  ;;  %v5431_v37 = vcombine.high %v5409_v40, %v5409_v40  ;;  %v1281_v42 = vcombine.low %v5409_v40, %v5413_v22 }
 0x119   :  { %6742 = vst [vmem:[#allocation21_spill] sm:$0xff] %v5405_v41  ;;  %v1433_v28 = vsel %vm1424_vm2, %v5405_v41, 0.0  ;;  %v5427_v36 = vcombine.low %v1407_v11, %v1414_v23  ;;  %v1296_v56 = vrot.slane %v1280_v4, %v5100_v18  ;;  %v1352_v11 = vrot.slane %v1330_v51, %v5100_v18 }
 0x11a   :  { %v1434_v44 = vadd.f32 %v1433_v28, %v1432_v58  ;;  %v5437_v39 = vcombine.high %v5416_v26, %v5416_v26  ;;  %v1328_v62 = vcombine.low %v5416_v26, %v5420_v61  ;;  %v1282_v23 = vcombine.low %v5431_v37, %v5403_v19 }
 0x11b   :  { %6743 = vst [vmem:[#allocation22_spill] sm:$0xff] %v5427_v36  ;;  %v1311_v38 = vcombine.low %v1289_v27, %v1296_v56  ;;  %v1303_v58 = vrot.slane %v1281_v42, %v5100_v18  ;;  %v1361_v12 = vcombine.low %v1352_v11, %v1359_v57 }
 0x11c   :  { %v1329_v52 = vcombine.low %v5437_v39, %v5281_v45  ;;  %v1310_v28 = vrot.slane %v1282_v23, %v5100_v18  ;;  %v1338_v34 = vrot.slane %v1328_v62, %v5100_v18 }
 0x11d   :  { %v1319_v54 = vrot.slane %v1311_v38, %v5100_v18  ;;  %v1375_v51 = vrot.slane %v1361_v12, %v5100_v18  ;;  %v1439_v38 = vsel %vm1430_vm3, %v5427_v36, 0.0  ;;  %v716_v36 = vcombine.high %v5253_v21, %v5253_v21 }
 0x11e   :  { %v1345_v4 = vrot.slane %v1329_v52, %v5100_v18  ;;  %v1312_v5 = vcombine.low %v1303_v58, %v1310_v28  ;;  %v714_v52 = vcombine.high %v5250_v15, %v5250_v15 }
 0x120   :  { %v1360_v43 = vcombine.low %v1338_v34, %v1345_v4  ;;  %v1326_v33 = vrot.slane %v1312_v5, %v5100_v18  ;;  %v713_v5 = vcombine.high %v5240_v6, %v5240_v6 }
 0x122   :  { %v1368_v27 = vrot.slane %v1360_v43, %v5100_v18  ;;  %v5455_v56 = vcombine.low %v1319_v54, %v1326_v33 }
 0x124   :  { %6744 = vst [vmem:[#allocation23_spill] sm:$0xff] %v5455_v56  ;;  %v5457_v42 = vcombine.low %v1368_v27, %v1375_v51  ;;  %v1435_v57 = vsel %vm1424_vm2, %v5455_v56, 0.0  ;;  %v763_v51 = vcombine.high %v5170_v17, %v5170_v17  ;;  %v664_v27 = vcombine.high %v5180_v24, %v5180_v24 }
 0x125   :  { %v1436_v62 = vadd.f32 %v1435_v57, %v1434_v44  ;;  %v762_v44 = vcombine.high %v5161_v13, %v5161_v13  ;;  %v764_v57 = vcombine.high %v5164_v14, %v5164_v14 }
 0x126   :  { %6745 = vst [vmem:[#allocation24_spill] sm:$0xff] %v5457_v42  ;;  %v1437_v34 = vsel %vm1424_vm2, %v5457_v42, 0.0  ;;  %v715_v42 = vcombine.high %v5243_v8, %v5243_v8 }
 0x127   :  { %v1438_v12 = vadd.f32 %v1437_v34, %v1436_v62  ;;  %v665_v62 = vcombine.high %v5190_v29, %v5190_v29 }
 0x129   :  { %v1440_v33 = vadd.f32 %v1439_v38, %v1438_v12  ;;  %v765_v38 = vcombine.high %v5173_v20, %v5173_v20 }
 0x12b   :  { %v1441_v43 = vrot.slane %v1440_v33, 4 }
 0x12d   :  { %v1442_v54 = vadd.f32 %v1441_v43, %v1440_v33  ;;  %v666_v33 = vcombine.high %v5167_v16, %v5167_v16  ;;  %v667_v43 = vcombine.high %v5183_v25, %v5183_v25 }
 0x12f   :  { %v1443_v23 = vrot.slane %v1442_v54, 2 }
 0x131   :  { %v1444_v11 = vadd.f32 %v1443_v23, %v1442_v54  ;;  %v811_v54 = vcombine.high %v5214_v49, %v5214_v49  ;;  %v813_v23 = vcombine.high %v5211_v47, %v5211_v47 }
 0x133   :  { %v1445_v58 = vrot.slane %v1444_v11, 1 }
 0x135   :  { %v1446_v28 = vadd.f32 %v1445_v58, %v1444_v11 }
 0x137   :  { %v5469_v4 = vmul.f32 0.01724138, %v1446_v28 }
 0x139   :  { %6746 = vst [vmem:[#allocation25_spill] sm:$0xff] %v5469_v4  ;;  %v1449_v34 = vcombine.high %v5469_v4, %v5469_v4  ;;  %v1456_v12 = vrot.slane %v5469_v4, %v5100_v18 }
 0x13b   :  { %v1463_v11 = vrot.slane %v1449_v34, %v5100_v18  ;;  %v1464_v58 = vcombine.high %v1456_v12, %v1456_v12  ;;  %v5497_v28 = vrot.slane %v1456_v12, %v5100_v18 }
 0x13d   :  { %v1465_v41 = vcombine.high %v1463_v11, %v1463_v11  ;;  %v5508_v56 = vrot.slane %v1463_v11, %v5100_v18  ;;  %v5511_v34 = vrot.slane %v1464_v58, %v5100_v18  ;;  %v5515_v12 = vcombine.high %v5497_v28, %v5497_v28  ;;  %v4953_v58 = vld [vmem:[%s6679_s4 + $0x40] sm:$0xff]  }
 0x13e   :  { %v5519_v4 = vsub.f32 %v5180_v24, %v5497_v28  ;;  %v5523_v1 = vsub.f32 %v5240_v6, %v5497_v28  ;;  %v5527_v60 = vsub.f32 %v5161_v13, %v5497_v28  ;;  %v5531_v11 = vsub.f32 %v5214_v49, %v5497_v28  ;;  %v4954_v24 = vld [vmem:[%s6679_s4] sm:$0xff]   ;;  %v4955_v6 = vld [vmem:[%s6679_s4 + $0x48] sm:$0xff]   ;;  %4872 = vmatprep.subr.bf16.mxu1 %v4953_v58 }
 0x13f   :  { %6747 = vst [vmem:[#allocation26_spill] sm:$0xff] %v5508_v56  ;;  %6748 = vst [vmem:[#allocation27_spill] sm:$0xff] %v5515_v12  ;;  %v1495_v13 = vcombine.high %v5508_v56, %v5508_v56  ;;  %v1496_v49 = vcombine.high %v5511_v34, %v5511_v34  ;;  %v5554_v46 = vsub.f32 %v5243_v8, %v5511_v34  ;;  %4873 = vmatpush3.bf16.msra.mxu1 %v4954_v24 }
 0x140   :  { %6749 = vst [vmem:[#allocation28_spill] sm:$0xff] %v5519_v4  ;;  %6750 = vst [vmem:[#allocation29_spill] sm:$0xff] %v5523_v1  ;;  %v1493_v1 = vrot.slane %v1465_v41, %v5100_v18  ;;  %v1510_v4 = vsub.f32 %v5190_v29, %v5508_v56  ;;  %v5557_v41 = vsub.f32 %v713_v5, %v5515_v12  ;;  %4874 = vmatprep.subr.bf16.mxu1 %v4955_v6  ;;  %v6759_v6 = vld [vmem:[#allocation11_spill] sm:$0xff] }
 0x141   :  { %6751 = vst [vmem:[#allocation30_spill] sm:$0xff] %v5527_v60  ;;  %6752 = vst [vmem:[#allocation31_spill] sm:$0xff] %v5531_v11  ;;  %v1507_v11 = vsub.f32 %v5167_v16, %v5511_v34  ;;  %v1508_v60 = vsub.f32 %v664_v27, %v5515_v12  ;;  %v1509_v2 = vsub.f32 %v666_v33, %v1496_v49  ;;  %v4956_v16 = vld [vmem:[%s6679_s4 + $0x8] sm:$0xff]  }
 0x142   :  { %6753 = vst [vmem:[#allocation32_spill] sm:$0xff] %v5554_v46  ;;  %6754 = vst [vmem:[#allocation33_spill] sm:$0xff] %v5557_v41  ;;  %v1497_v18 = vcombine.high %v1493_v1, %v1493_v1  ;;  %v1511_v0 = vsub.f32 %v5183_v25, %v1493_v1  ;;  %v1512_v48 = vsub.f32 %v665_v62, %v1495_v13 }
 0x143   :  { %v1517_v27 = vsub.f32 %v715_v42, %v1496_v49  ;;  %v1518_v29 = vsub.f32 %v5250_v15, %v5508_v56  ;;  %v1519_v8 = vsub.f32 %v5253_v21, %v1493_v1  ;;  %v1520_v46 = vsub.f32 %v714_v52, %v1495_v13  ;;  %4875 = vmatpush3.bf16.msra.mxu1 %v4956_v16  ;;  %v6760_v16 = vld [vmem:[#allocation13_spill] sm:$0xff] }
 0x144   :  { %v1513_v5 = vsub.f32 %v667_v43, %v1497_v18  ;;  %v1521_v58 = vsub.f32 %v716_v36, %v1497_v18  ;;  %v1523_v33 = vsub.f32 %v5164_v14, %v5511_v34  ;;  %v1524_v25 = vsub.f32 %v762_v44, %v5515_v12  ;;  %v6756_v43 = vld [vmem:[#allocation12_spill] sm:$0xff] }
 0x145   :  { %v1525_v62 = vsub.f32 %v764_v57, %v1496_v49  ;;  %v1526_v24 = vsub.f32 %v5170_v17, %v5508_v56  ;;  %v1527_v42 = vsub.f32 %v5173_v20, %v1493_v1  ;;  %v1528_v41 = vsub.f32 %v763_v51, %v1495_v13 }
 0x146   :  { %v1529_v45 = vsub.f32 %v765_v38, %v1497_v18  ;;  %v1531_v15 = vsub.f32 %v5211_v47, %v5511_v34  ;;  %v1532_v21 = vsub.f32 %v811_v54, %v5515_v12  ;;  %v1533_v52 = vsub.f32 %v813_v23, %v1496_v49  ;;  %v6755_v38 = vld [vmem:[#allocation10_spill] sm:$0xff]  ;;  %v6757_v54 = vld [vmem:[#allocation15_spill] sm:$0xff]  ;;  %v6758_v23 = vld [vmem:[#allocation17_spill] sm:$0xff] }
 0x147   :  { %v1534_v14 = vsub.f32 %v5217_v50, %v5508_v56  ;;  %v1535_v36 = vsub.f32 %v5237_v3, %v5497_v28  ;;  %v1536_v17 = vsub.f32 %v5263_v30, %v5511_v34  ;;  %v1537_v20 = vsub.f32 %v5300_v59, %v5515_v12 }
 0x148   :  { %v1538_v44 = vsub.f32 %v5307_v63, %v1496_v49  ;;  %v1539_v47 = vsub.f32 %v5327_v9, %v5508_v56  ;;  %v1540_v51 = vsub.f32 %v5331_v10, %v1493_v1  ;;  %v1541_v57 = vsub.f32 %v5345_v32, %v1495_v13 }
 0x149   :  { %v1542_v50 = vsub.f32 %v5324_v7, %v1497_v18  ;;  %v1543_v3 = vsub.f32 %v5341_v31, %v5497_v28  ;;  %v1544_v30 = vsub.f32 %v5353_v35, %v5511_v34  ;;  %v1545_v59 = vsub.f32 %v5391_v53, %v5515_v12 }
 0x14a   :  { %v1546_v63 = vsub.f32 %v5398_v55, %v1496_v49  ;;  %v1547_v9 = vsub.f32 %v5409_v40, %v5508_v56  ;;  %v1548_v10 = vsub.f32 %v5413_v22, %v1493_v1  ;;  %v1549_v32 = vsub.f32 %v5431_v37, %v1495_v13 }
 0x14b   :  { %v1550_v7 = vsub.f32 %v5403_v19, %v1497_v18  ;;  %v1551_v31 = vsub.f32 %v5416_v26, %v5497_v28  ;;  %v1552_v35 = vsub.f32 %v5420_v61, %v5511_v34  ;;  %v1553_v53 = vsub.f32 %v5437_v39, %v5515_v12  ;;  %v6761_v61 = vld [vmem:[#allocation16_spill] sm:$0xff]  ;;  %v6762_v39 = vld [vmem:[#allocation27_spill] sm:$0xff] }
 0x14c   :  { %v1554_v55 = vsub.f32 %v6755_v38, %v1496_v49  ;;  %v1555_v40 = vsub.f32 %v6756_v43, %v5508_v56  ;;  %v1556_v22 = vsub.f32 %v6757_v54, %v1493_v1  ;;  %v1557_v37 = vsub.f32 %v6758_v23, %v1495_v13  ;;  %v6763_v38 = vld [vmem:[#allocation18_spill] sm:$0xff]  ;;  %v6764_v56 = vld [vmem:[#allocation19_spill] sm:$0xff]  ;;  %v6766_v13 = vld [vmem:[#allocation20_spill] sm:$0xff] }
 0x14d   :  { %v1558_v19 = vsub.f32 %v6759_v6, %v1497_v18  ;;  %v1559_v26 = vsub.f32 %v6760_v16, %v5497_v28  ;;  %v1560_v12 = vsub.f32 %v6761_v61, %v5511_v34  ;;  %v1561_v43 = vsub.f32 %v6763_v38, %v6762_v39  ;;  %v6765_v54 = vld [vmem:[#allocation26_spill] sm:$0xff]  ;;  %v6767_v6 = vld [vmem:[#allocation28_spill] sm:$0xff] }
 0x14e   :  { %v1562_v1 = vsub.f32 %v6764_v56, %v1496_v49  ;;  %v1563_v23 = vsub.f32 %v6766_v13, %v6765_v54  ;;  %v5624_v18 = vmul.f32 %v6767_v6, %v6767_v6  ;;  %v5626_v16 = vmul.f32 %v1507_v11, %v1507_v11  ;;  %v6772_v49 = vld [vmem:[#allocation29_spill] sm:$0xff]  ;;  %v6774_v13 = vld [vmem:[#allocation32_spill] sm:$0xff] }
 0x14f   :  { %v5628_v28 = vmul.f32 %v1508_v60, %v1508_v60  ;;  %v5630_v34 = vmul.f32 %v1509_v2, %v1509_v2  ;;  %v5632_v61 = vmul.f32 %v1510_v4, %v1510_v4  ;;  %v5634_v38 = vmul.f32 %v1511_v0, %v1511_v0  ;;  %v6775_v6 = vld [vmem:[#allocation33_spill] sm:$0xff] }
 0x150   :  { %v5636_v39 = vmul.f32 %v1512_v48, %v1512_v48  ;;  %v5638_v56 = vmul.f32 %v1513_v5, %v1513_v5  ;;  %v5642_v54 = vmul.f32 %v6772_v49, %v6772_v49  ;;  %v1573_v11 = vmul.f32 %v6774_v13, %v6774_v13 }
 0x151   :  { %6768 = vst [vmem:[#allocation10_spill] sm:$0xff] %v5628_v28  ;;  %6769 = vst [vmem:[#allocation12_spill] sm:$0xff] %v5632_v61  ;;  %v1574_v60 = vmul.f32 %v6775_v6, %v6775_v6  ;;  %v1575_v2 = vmul.f32 %v1517_v27, %v1517_v27  ;;  %v1576_v28 = vmul.f32 %v1518_v29, %v1518_v29 }
 0x152   :  { %6770 = vst [vmem:[#allocation15_spill] sm:$0xff] %v5634_v38  ;;  %6771 = vst [vmem:[#allocation17_spill] sm:$0xff] %v5636_v39  ;;  %v1577_v4 = vmul.f32 %v1519_v8, %v1519_v8  ;;  %v1578_v61 = vmul.f32 %v1520_v46, %v1520_v46  ;;  %v1579_v0 = vmul.f32 %v1521_v58, %v1521_v58  ;;  %v6776_v38 = vld [vmem:[#allocation30_spill] sm:$0xff]  ;;  %v6777_v46 = vld [vmem:[#allocation31_spill] sm:$0xff] }
 0x153   :  { %6773 = vst [vmem:[#allocation11_spill] sm:$0xff] %v5642_v54  ;;  %v5650_v48 = vmul.f32 %v6776_v38, %v6776_v38  ;;  %v5652_v5 = vmul.f32 %v1523_v33, %v1523_v33  ;;  %v5654_v39 = vmul.f32 %v1524_v25, %v1524_v25  ;;  %v5656_v49 = vmul.f32 %v1525_v62, %v1525_v62 }
 0x154   :  { %v5658_v54 = vmul.f32 %v1526_v24, %v1526_v24  ;;  %v5660_v13 = vmul.f32 %v1527_v42, %v1527_v42  ;;  %v5662_v6 = vmul.f32 %v1528_v41, %v1528_v41  ;;  %v5664_v27 = vmul.f32 %v1529_v45, %v1529_v45 }
 0x155   :  { %v5668_v29 = vmul.f32 %v6777_v46, %v6777_v46  ;;  %v5670_v8 = vmul.f32 %v1531_v15, %v1531_v15  ;;  %v5672_v58 = vmul.f32 %v1532_v21, %v1532_v21  ;;  %v5674_v33 = vmul.f32 %v1533_v52, %v1533_v52 }
 0x156   :  { %v5676_v25 = vmul.f32 %v1534_v14, %v1534_v14  ;;  %v5678_v62 = vmul.f32 %v1535_v36, %v1535_v36  ;;  %v5680_v24 = vmul.f32 %v1536_v17, %v1536_v17  ;;  %v5682_v41 = vmul.f32 %v1537_v20, %v1537_v20 }
 0x157   :  { %v5684_v45 = vmul.f32 %v1538_v44, %v1538_v44  ;;  %v5686_v42 = vmul.f32 %v1539_v47, %v1539_v47  ;;  %v5688_v38 = vmul.f32 %v1540_v51, %v1540_v51  ;;  %v5690_v15 = vmul.f32 %v1541_v57, %v1541_v57 }
 0x158   :  { %v5692_v21 = vmul.f32 %v1542_v50, %v1542_v50  ;;  %v5694_v52 = vmul.f32 %v1543_v3, %v1543_v3  ;;  %v5696_v14 = vmul.f32 %v1544_v30, %v1544_v30  ;;  %v5698_v36 = vmul.f32 %v1545_v59, %v1545_v59  ;;  %v6785_v46 = vld [vmem:[#allocation12_spill] sm:$0xff] }
 0x159   :  { %v5700_v17 = vmul.f32 %v1546_v63, %v1546_v63  ;;  %v5702_v20 = vmul.f32 %v1547_v9, %v1547_v9  ;;  %v5704_v44 = vmul.f32 %v1548_v10, %v1548_v10  ;;  %v5706_v47 = vmul.f32 %v1549_v32, %v1549_v32 }
 0x15a   :  { %v5708_v51 = vmul.f32 %v1550_v7, %v1550_v7  ;;  %v5710_v57 = vmul.f32 %v1551_v31, %v1551_v31  ;;  %v5712_v50 = vmul.f32 %v1552_v35, %v1552_v35  ;;  %v5714_v3 = vmul.f32 %v1553_v53, %v1553_v53 }
 0x15b   :  { %v5716_v30 = vmul.f32 %v1554_v55, %v1554_v55  ;;  %v5718_v59 = vmul.f32 %v1555_v40, %v1555_v40  ;;  %v5720_v63 = vmul.f32 %v1556_v22, %v1556_v22  ;;  %v5722_v9 = vmul.f32 %v1557_v37, %v1557_v37  ;;  %v6783_v40 = vld [vmem:[#allocation10_spill] sm:$0xff]  ;;  %v6784_v37 = vld [vmem:[#allocation15_spill] sm:$0xff] }
 0x15c   :  { %v5724_v10 = vmul.f32 %v1558_v19, %v1558_v19  ;;  %v5726_v32 = vmul.f32 %v1559_v26, %v1559_v26  ;;  %v5728_v7 = vmul.f32 %v1560_v12, %v1560_v12  ;;  %v5730_v31 = vmul.f32 %v1561_v43, %v1561_v43  ;;  %v6786_v26 = vld [vmem:[#allocation17_spill] sm:$0xff]  ;;  %v6787_v12 = vld [vmem:[#allocation11_spill] sm:$0xff] }
 0x15d   :  { %v5732_v35 = vmul.f32 %v1562_v1, %v1562_v1  ;;  %v5734_v53 = vmul.f32 %v1563_v23, %v1563_v23  ;;  %v1680_v55 = vcombine.low %v5624_v18, %v5626_v16  ;;  %v1681_v22 = vcombine.low %v6783_v40, %v5630_v34 }
 0x15e   :  { %6778 = vst [vmem:[#allocation13_spill] sm:$0xff] %v5726_v32  ;;  %6779 = vst [vmem:[#allocation16_spill] sm:$0xff] %v5728_v7  ;;  %v1682_v19 = vcombine.low %v6785_v46, %v6784_v37  ;;  %v1683_v32 = vcombine.low %v6786_v26, %v5638_v56  ;;  %v1729_v7 = vcombine.low %v6787_v12, %v1573_v11 }
 0x15f   :  { %6780 = vst [vmem:[#allocation27_spill] sm:$0xff] %v5730_v31  ;;  %6781 = vst [vmem:[#allocation18_spill] sm:$0xff] %v5732_v35  ;;  %v1730_v43 = vcombine.low %v1574_v60, %v1575_v2  ;;  %v1731_v31 = vcombine.low %v1576_v28, %v1577_v4  ;;  %v1732_v1 = vcombine.low %v1578_v61, %v1579_v0  ;;  %v6788_v35 = vld [vmem:[#allocation6_spill] sm:$0xff] }
 0x160   :  { %6782 = vst [vmem:[#allocation19_spill] sm:$0xff] %v5734_v53  ;;  %v1690_v23 = vrot.slane %v1680_v55, %v6788_v35  ;;  %v1697_v53 = vrot.slane %v1681_v22, %v6788_v35  ;;  %v1704_v18 = vrot.slane %v1682_v19, %v6788_v35  ;;  %v1711_v16 = vrot.slane %v1683_v32, %v6788_v35 }
 0x161   :  { %v1739_v34 = vrot.slane %v1729_v7, %v6788_v35  ;;  %v1746_v40 = vrot.slane %v1730_v43, %v6788_v35  ;;  %v1753_v37 = vrot.slane %v1731_v31, %v6788_v35  ;;  %v1760_v56 = vrot.slane %v1732_v1, %v6788_v35 }
 0x162   :  { %v1712_v11 = vcombine.low %v1690_v23, %v1697_v53  ;;  %v1713_v60 = vcombine.low %v1704_v18, %v1711_v16  ;;  %v1778_v28 = vcombine.low %v5650_v48, %v5652_v5  ;;  %v1779_v61 = vcombine.low %v5654_v39, %v5656_v49 }
 0x163   :  { %v1761_v2 = vcombine.low %v1739_v34, %v1746_v40  ;;  %v1762_v4 = vcombine.low %v1753_v37, %v1760_v56  ;;  %v1780_v0 = vcombine.low %v5658_v54, %v5660_v13  ;;  %v1781_v32 = vcombine.low %v5662_v6, %v5664_v27 }
 0x164   :  { %v5762_v7 = vrot.slane %v1712_v11, %v6788_v35  ;;  %v1727_v31 = vrot.slane %v1713_v60, %v6788_v35  ;;  %v1788_v53 = vrot.slane %v1778_v28, %v6788_v35  ;;  %v1795_v48 = vrot.slane %v1779_v61, %v6788_v35 }
 0x165   :  { %v1769_v5 = vrot.slane %v1761_v2, %v6788_v35  ;;  %v1776_v39 = vrot.slane %v1762_v4, %v6788_v35  ;;  %v1802_v49 = vrot.slane %v1780_v0, %v6788_v35  ;;  %v1809_v54 = vrot.slane %v1781_v32, %v6788_v35  ;;  %v6789_v28 = vld [vmem:[#allocation16_spill] sm:$0xff]  ;;  %v6790_v61 = vld [vmem:[#allocation13_spill] sm:$0xff] }
 0x166   :  { %v1728_v13 = vcombine.low %v5762_v7, %v1727_v31  ;;  %v1810_v6 = vcombine.low %v1788_v53, %v1795_v48  ;;  %v1827_v27 = vcombine.low %v5668_v29, %v5670_v8  ;;  %v1828_v55 = vcombine.low %v5672_v58, %v5674_v33 }
 0x167   :  { %v1777_v22 = vcombine.low %v1769_v5, %v1776_v39  ;;  %v1811_v46 = vcombine.low %v1802_v49, %v1809_v54  ;;  %v1849_v19 = vrot.slane %v5676_v25, %v6788_v35  ;;  %v1866_v26 = vcombine.low %v5678_v62, %v5680_v24  ;;  %v6793_v53 = vld [vmem:[#allocation19_spill] sm:$0xff] }
 0x168   :  { %v1818_v12 = vrot.slane %v1810_v6, %v6788_v35  ;;  %v1835_v43 = vrot.slane %v1827_v27, %v6788_v35  ;;  %v1842_v1 = vrot.slane %v1828_v55, %v6788_v35  ;;  %v1867_v29 = vcombine.low %v5682_v41, %v5684_v45 }
 0x169   :  { %v1825_v8 = vrot.slane %v1811_v46, %v6788_v35  ;;  %v1864_v58 = vrot.slane %v1849_v19, %v6788_v35  ;;  %v1868_v33 = vcombine.low %v5686_v42, %v5688_v38  ;;  %v1869_v25 = vcombine.low %v5690_v15, %v5692_v21 }
 0x16a   :  { %v1850_v62 = vcombine.low %v1835_v43, %v1842_v1  ;;  %v1876_v24 = vrot.slane %v1866_v26, %v6788_v35  ;;  %v1883_v23 = vrot.slane %v1867_v29, %v6788_v35  ;;  %v1915_v18 = vcombine.low %v5694_v52, %v5696_v14 }
 0x16b   :  { %v1826_v16 = vcombine.low %v1818_v12, %v1825_v8  ;;  %v1890_v41 = vrot.slane %v1868_v33, %v6788_v35  ;;  %v1897_v45 = vrot.slane %v1869_v25, %v6788_v35  ;;  %v1916_v34 = vcombine.low %v5698_v36, %v5700_v17 }
 0x16c   :  { %v1857_v42 = vrot.slane %v1850_v62, %v6788_v35  ;;  %v1898_v38 = vcombine.low %v1876_v24, %v1883_v23  ;;  %v1917_v15 = vcombine.low %v5702_v20, %v5704_v44  ;;  %v1918_v21 = vcombine.low %v5706_v47, %v5708_v51 }
 0x16d   :  { %v1899_v40 = vcombine.low %v1890_v41, %v1897_v45  ;;  %v1925_v52 = vrot.slane %v1915_v18, %v6788_v35  ;;  %v1932_v14 = vrot.slane %v1916_v34, %v6788_v35  ;;  %v1964_v37 = vcombine.low %v5710_v57, %v5712_v50 }
 0x16e   :  { %v1865_v56 = vcombine.low %v1857_v42, %v1864_v58  ;;  %v1906_v36 = vrot.slane %v1898_v38, %v6788_v35  ;;  %v1939_v17 = vrot.slane %v1917_v15, %v6788_v35  ;;  %v1946_v11 = vrot.slane %v1918_v21, %v6788_v35 }
 0x16f   :  { %v1913_v20 = vrot.slane %v1899_v40, %v6788_v35  ;;  %v1947_v44 = vcombine.low %v1925_v52, %v1932_v14  ;;  %v1965_v47 = vcombine.low %v5714_v3, %v5716_v30  ;;  %v1966_v51 = vcombine.low %v5718_v59, %v5720_v63  ;;  %v6791_v59 = vld [vmem:[#allocation18_spill] sm:$0xff]  ;;  %v6792_v63 = vld [vmem:[#allocation27_spill] sm:$0xff]  ;;  %v1042_v52 = vld [vmem:[%s6677_s2] sm:$0x1]  ;;  %s5007_s2 = smov [#allocation2]  }
 0x170   :  { %v1948_v60 = vcombine.low %v1939_v17, %v1946_v11  ;;  %v1967_v57 = vcombine.low %v5722_v9, %v5724_v10  ;;  %v1974_v50 = vrot.slane %v1964_v37, %v6788_v35  ;;  %v2013_v2 = vcombine.low %v6790_v61, %v6789_v28  ;;  %v6797_v28 = vld [vmem:[#allocation7_spill] sm:$0xff] }
 0x171   :  { %v1914_v4 = vcombine.low %v1906_v36, %v1913_v20  ;;  %v1955_v0 = vrot.slane %v1947_v44, %v6788_v35  ;;  %v1981_v32 = vrot.slane %v1965_v47, %v6788_v35  ;;  %v1988_v7 = vrot.slane %v1966_v51, %v6788_v35  ;;  %v6794_v36 = vld [vmem:[#allocation25_spill] sm:$0xff] }
 0x172   :  { %v1962_v3 = vrot.slane %v1948_v60, %v6788_v35  ;;  %v1995_v30 = vrot.slane %v1967_v57, %v6788_v35  ;;  %v2014_v31 = vcombine.low %v6792_v63, %v6791_v59  ;;  %v2021_v9 = vrot.slane %v2013_v2, %v6788_v35  ;;  %v6795_v20 = vld [vmem:[#allocation5_spill] sm:$0xff] }
 0x173   :  { %v1996_v10 = vcombine.low %v1974_v50, %v1981_v32  ;;  %v2035_v48 = vrot.slane %v6793_v53, %v6788_v35  ;;  %v2060_v5 = vsel %vm1424_vm2, %v1728_v13, 0.0  ;;  %v2061_v39 = vsel %vm1424_vm2, %v1777_v22, 0.0  ;;  %v6796_v50 = vld [vmem:[#allocation8_spill] sm:$0xff]  ;;  %v6800_v32 = vld [vmem:[#allocation9_spill] sm:$0xff] }
 0x174   :  { %v1963_v49 = vcombine.low %v1955_v0, %v1962_v3  ;;  %v1997_v54 = vcombine.low %v1988_v7, %v1995_v30  ;;  %v2028_v6 = vrot.slane %v2014_v31, %v6788_v35  ;;  %v2062_v27 = vadd.f32 %v2061_v39, %v2060_v5  ;;  %v6799_v0 = vld [vmem:[#allocation14_spill] sm:$0xff]  ;;  %v6802_v30 = vld [vmem:[#allocation23_spill] sm:$0xff]  ;;  %v6803_v59 = vld [vmem:[#allocation21_spill] sm:$0xff] }
 0x175   :  { %v2063_v55 = vsel %vm1424_vm2, %v1826_v16, 0.0  ;;  %v2004_v46 = vrot.slane %v1996_v10, %v6788_v35  ;;  %v2065_v43 = vsel %vm1430_vm3, %v1865_v56, 0.0  ;;  %v2050_v22 = vrot.slane %v2035_v48, %v6788_v35  ;;  %v1043_v56 = vld [vmem:[%s6678_s3] sm:$0x1]  ;;  %v4957_v39 = vld [vmem:[%s6679_s4 + $0x50] sm:$0xff]   ;;  %s4790_s3 = sshll.u32 %s5007_s2, 4  ;;  %s4791_s3 = int_to_ptr.vmem [resolvable:$true] %s4790_s3 }
 0x176   :  { %v2011_v19 = vrot.slane %v1997_v54, %v6788_v35  ;;  %v2036_v26 = vcombine.low %v2021_v9, %v2028_v6  ;;  %v2064_v12 = vadd.f32 %v2063_v55, %v2062_v27  ;;  %v2067_v8 = vsel %vm1424_vm2, %v1914_v4, 0.0  ;;  %v6805_v9 = vld [vmem:[#allocation22_spill] sm:$0xff]  ;;  %v6806_v10 = vld [vmem:[#allocation24_spill] sm:$0xff]  ;;  %4876 = vmatprep.subr.bf16.mxu1 %v4957_v39  ;;  %s4979_s30 = scalar_lea.vmem %s4791_s3, 32  ;;  %p4984_p1 = scmp.lt.s32.totalorder %s4791_s3, %s4791_s3 }
 0x177   :  { %v2069_v25 = vsel %vm1424_vm2, %v1963_v49, 0.0  ;;  %v5852_v44 = vsub.s32 0, %v6795_v20  ;;  %v6798_v61 = vpack.c.bf16 %v6796_v50, %v6797_v28  ;;  %v6801_v7 = vpack.c.bf16 %v6799_v0, %v6800_v32  ;;  %v4958_v49 = vld [vmem:[%s6679_s4 + $0x10] sm:$0xff]   ;;  %v4961_v28 = vld [vmem:[%s6679_s4 + $0x60] sm:$0xff]   ;;  %v4964_v0 = vld [vmem:[%s6679_s4 + $0x28] sm:$0xff]   ;;  %p4980_p0 = scmp.ne.s32.totalorder %s4791_s3, %s4979_s30  ;;  %p4985_p2 = scmp.lt.s32.totalorder %s4979_s30, %s4979_s30 }
 0x178   :  { %v2012_v1 = vcombine.low %v2004_v46, %v2011_v19  ;;  %v2043_v13 = vrot.slane %v2036_v26, %v6788_v35  ;;  %v2066_v29 = vadd.f32 %v2065_v43, %v2064_v12  ;;  %v6804_v63 = vpack.c.bf16 %v6802_v30, %v6803_v59  ;;  %4877 = vmatpush3.bf16.msra.mxu1 %v4958_v49  ;;  %v4965_v32 = vld [vmem:[%s6679_s4 + $0x70] sm:$0xff]   ;;  %v4968_v30 = vld [vmem:[%s6679_s4 + $0x38] sm:$0xff]  }
 0x179   :  { %v6807_v53 = vpack.c.bf16 %v6805_v9, %v6806_v10  ;;  %v6713_v46 = vmov 0   ;;  %p4986_p3 = por %p4985_p2, %p4984_p1 }
 0x17a   :  { %v2051_v58 = vcombine.low %v2043_v13, %v2050_v22  ;;  %v2068_v33 = vadd.f32 %v2067_v8, %v2066_v29  ;;  %v2071_v24 = vsel %vm1424_vm2, %v2012_v1, 0.0 }
 0x17b   :  { %p4987_p4 = pnand %p4986_p3, %p4980_p0 }
 0x17c   :  { %v2070_v62 = vadd.f32 %v2069_v25, %v2068_v33  ;;  %v2073_v18 = vsel %vm1430_vm3, %v2051_v58, 0.0 }
 0x17e   :  { %v2072_v23 = vadd.f32 %v2071_v24, %v2070_v62 }
 0x180   :  { %v2074_v16 = vadd.f32 %v2073_v18, %v2072_v23 }
 0x182   :  { %v2075_v41 = vrot.slane %v2074_v16, 4 }
 0x184   :  { %v2076_v45 = vadd.f32 %v2075_v41, %v2074_v16 }
 0x186   :  { %v2077_v34 = vrot.slane %v2076_v45, 2 }
 0x188   :  { %v2078_v42 = vadd.f32 %v2077_v34, %v2076_v45 }
 0x18a   :  { %v2079_v38 = vrot.slane %v2078_v42, 1 }
 0x18c   :  { %v2080_v15 = vadd.f32 %v2079_v38, %v2078_v42 }
 0x18e   :  { %v2081_v21 = vmul.f32 0.01724138, %v2080_v15 }
 0x190   :  { %v2082_v40 = vadd.f32 1e-05, %v2081_v21 }
 0x192   :  { %4973 = vrsqrt.f32 %v2082_v40 }
 0x19c   :  { %v4974_v14 = vpop.eup %4973 }
 0x19d   :  { %v2084_v37 = vmul.f32 %v4974_v14, %v1042_v52  ;;  %v4959_v52 = vld [vmem:[%s6679_s4 + $0x58] sm:$0xff]  }
 0x19e   :  { %v4960_v14 = vld [vmem:[%s6679_s4 + $0x18] sm:$0xff]   ;;  %4878 = vmatprep.subr.bf16.mxu1 %v4959_v52 }
 0x19f   :  { %v2085_v17 = vmul.f32 %v2084_v37, %v6794_v36  ;;  %v2091_v11 = vpack.c.bf16 %v2084_v37, %v2084_v37  ;;  %4879 = vmatpush3.bf16.msra.mxu1 %v4960_v14 }
 0x1a0   :  { %4880 = vmatprep.subr.bf16.mxu1 %v4961_v28 }
 0x1a1   :  { %v2086_v47 = vsub.f32 %v1043_v56, %v2085_v17  ;;  %v2093_v51 = vpack.i.b16 %v2091_v11, %v2091_v11 }
 0x1a3   :  { %v2098_v60 = vrot.slane %v2093_v51, %v5852_v44  ;;  %v2103_v57 = vpack.c.bf16 %v2086_v47, %v2086_v47 }
 0x1a5   :  { %v2100_v2 = vmul.bf16 %v2098_v60, %v6798_v61  ;;  %v2105_v4 = vpack.i.b16 %v2103_v57, %v2103_v57  ;;  %v2099_v3 = vmul.bf16 %v2098_v60, %v6801_v7  ;;  %v2101_v31 = vmul.bf16 %v2098_v60, %v6804_v63  ;;  %v4962_v61 = vld [vmem:[%s6679_s4 + $0x20] sm:$0xff]   ;;  %v4966_v7 = vld [vmem:[%s6679_s4 + $0x30] sm:$0xff]  }
 0x1a6   :  { %v2102_v48 = vmul.bf16 %v2098_v60, %v6807_v53  ;;  %4881 = vmatpush3.bf16.msra.mxu1 %v4962_v61 }
 0x1a7   :  { %v2110_v5 = vrot.slane %v2105_v4, %v5852_v44  ;;  %v4963_v4 = vld [vmem:[%s6679_s4 + $0x68] sm:$0xff]  }
 0x1a8   :  { %4882 = vmatprep.subr.bf16.mxu1 %v4963_v4 }
 0x1a9   :  { %v2112_v54 = vadd.bf16 %v2110_v5, %v2100_v2  ;;  %v2111_v6 = vadd.bf16 %v2110_v5, %v2099_v3  ;;  %v2113_v27 = vadd.bf16 %v2110_v5, %v2101_v31  ;;  %v2114_v55 = vadd.bf16 %v2110_v5, %v2102_v48  ;;  %v4967_v3 = vld [vmem:[%s6679_s4 + $0x78] sm:$0xff]  }
 0x1aa   :  { %4883 = vmatpush3.bf16.msra.mxu1 %v4964_v0 }
 0x1ab   :  { %v5875_v19 = vmax.bf16 %v6713_v46, %v2112_v54  ;;  %v5878_v26 = vmax.bf16 %v6713_v46, %v2111_v6  ;;  %v5881_v12 = vmax.bf16 %v6713_v46, %v2113_v27  ;;  %v5884_v43 = vmax.bf16 %v6713_v46, %v2114_v55  ;;  %4884 = vmatprep.subr.bf16.mxu1 %v4965_v32 }
 0x1ad   :  { %v2128_v1 = vshll.u32 %v5875_v19, 16  ;;  %v2132_v13 = vshrl.u32 %v5875_v19, 16  ;;  %v2121_v22 = vshrl.u32 %v5878_v26, 16  ;;  %v2123_v29 = vshll.u32 %v5878_v26, 16 }
 0x1ae   :  { %v2136_v8 = vshrl.u32 %v5881_v12, 16  ;;  %v2138_v58 = vshll.u32 %v5881_v12, 16  ;;  %v2143_v33 = vshll.u32 %v5884_v43, 16  ;;  %v2147_v25 = vshrl.u32 %v5884_v43, 16  ;;  %4885 = vmatpush3.bf16.msra.mxu1 %v4966_v7 }
 0x1af   :  { %v2130_v62 = vrot.slane %v2128_v1, 1  ;;  %v2173_v24 = vrot.slane %v2132_v13, 1  ;;  %v2174_v23 = vrot.slane %v2128_v1, 2  ;;  %v2125_v18 = vrot.slane %v2123_v29, 1  ;;  %4886 = vmatprep.subr.bf16.mxu1 %v4967_v3 }
 0x1b0   :  { %v2140_v16 = vrot.slane %v2138_v58, 1  ;;  %v2170_v41 = vrot.slane %v2121_v22, 1  ;;  %v2171_v45 = vrot.slane %v2123_v29, 2  ;;  %v2177_v15 = vrot.slane %v2136_v8, 1 }
 0x1b1   :  { %v2134_v34 = vor.u32 %v2132_v13, %v2130_v62  ;;  %v2126_v42 = vor.u32 %v2125_v18, %v2121_v22  ;;  %v2178_v21 = vrot.slane %v2138_v58, 2  ;;  %v2180_v40 = vrot.slane %v2147_v25, 1 }
 0x1b2   :  { %v2141_v38 = vor.u32 %v2140_v16, %v2136_v8  ;;  %v2172_v56 = vor.u32 %v2171_v45, %v2170_v41  ;;  %v2175_v36 = vor.u32 %v2174_v23, %v2173_v24  ;;  %v2181_v17 = vrot.slane %v2143_v33, 2  ;;  %4887 = vmatpush3.bf16.msra.mxu1 %v4968_v30 }
 0x1b3   :  { %2152 = vrot.lane.b32.xlu1 %v2134_v34, %s5005_s18  ;;  %v2131_v37 = vsel %vm2119_vm4, %v2126_v42, %v2130_v62  ;;  %v2145_v11 = vrot.slane %v2143_v33, 1  ;;  %v2179_v51 = vor.u32 %v2178_v21, %v2177_v15  ;;  %v2163_v31 = vrot.slane %v5878_v26, 1 }
 0x1b4   :  { %2150 = vrot.lane.b32.xlu0 %v2131_v37, %s5005_s18  ;;  %v2182_v60 = vor.u32 %v2181_v17, %v2180_v40  ;;  %v2176_v57 = vsel %vm2169_vm5, %v2172_v56, %v2175_v36  ;;  %v2164_v9 = vrot.slane %v5875_v19, 1  ;;  %v2166_v53 = vrot.slane %v5881_v12, 1 }
 0x1b5   :  { %v2146_v47 = vsel %vm2119_vm4, %v2141_v38, %v2145_v11  ;;  %v2149_v2 = vor.u32 %v2147_v25, %v2145_v11  ;;  %v2167_v48 = vrot.slane %v5884_v43, 1 }
 0x1b6   :  { %v2183_v50 = vsel %vm2169_vm5, %v2179_v51, %v2182_v60  ;;  %v2165_v5 = vsel %vm2162_vm6, %v2163_v31, %v2164_v9 }
 0x1b7   :  { %2154 = vrot.lane.b32.xlu1 %v2146_v47, %s5005_s18  ;;  %v2168_v55 = vsel %vm2162_vm6, %v2166_v53, %v2167_v48 }
 0x1b8   :  { %2184 = vrot.lane.b32.xlu0 %v2176_v57, %s5005_s18 }
 0x1bb   :  { %2188 = vrot.lane.b32.xlu1 %v2183_v50, %s5005_s18 }
 0x1bc   :  { %2186 = vrot.lane.b32.xlu0 %v2175_v36, %s5005_s18 }
 0x1bf   :  { %2190 = vrot.lane.b32.xlu1 %v2182_v60, %s5005_s18 }
 0x1c0   :  { %2156 = vrot.lane.b32.xlu0 %v2149_v2, %s5005_s18 }
 0x225   :  { %v2153_v59 = vpop.permute.xlu1 %2152 }
 0x226   :  { %v2151_v63 = vpop.permute.xlu0 %2150  ;;  %v2195_v62 = vsel %vm1424_vm2, %v5875_v19, %v2153_v59 }
 0x227   :  { %v2193_v49 = vsel %vm1424_vm2, %v5878_v26, %v2151_v63 }
 0x229   :  { %v2155_v10 = vpop.permute.xlu1 %2154 }
 0x22a   :  { %v2185_v39 = vpop.permute.xlu0 %2184  ;;  %v2197_v13 = vsel %vm1424_vm2, %v5881_v12, %v2155_v10 }
 0x22b   :  { %v2202_v54 = vsel %vm1424_vm2, %v2165_v5, %v2185_v39 }
 0x22c   :  { %v2252_v6 = vcombine.low %v2193_v49, %v2202_v54  ;;  %v2253_v27 = vcombine.high %v2193_v49, %v2202_v54 }
 0x22d   :  { %v2189_v1 = vpop.permute.xlu1 %2188 }
 0x22e   :  { %v2260_v22 = vrot.slane %v2252_v6, %v6788_v35  ;;  %v2267_v29 = vrot.slane %v2253_v27, %v6788_v35  ;;  %v2208_v8 = vsel %vm1424_vm2, %v2168_v55, %v2189_v1  ;;  %v2187_v58 = vpop.permute.xlu0 %2186 }
 0x22f   :  { %v2342_v33 = vcombine.low %v2197_v13, %v2208_v8  ;;  %v2343_v25 = vcombine.high %v2197_v13, %v2208_v8  ;;  %v2205_v26 = vsel %vm1424_vm2, %v2164_v9, %v2187_v58 }
 0x230   :  { %v2268_v24 = vcombine.high %v2260_v22, %v2260_v22  ;;  %v2269_v23 = vcombine.high %v2267_v29, %v2267_v29  ;;  %v2302_v16 = vcombine.low %v2195_v62, %v2205_v26  ;;  %v2303_v41 = vcombine.high %v2195_v62, %v2205_v26 }
 0x231   :  { %v2350_v18 = vrot.slane %v2342_v33, %v6788_v35  ;;  %v2357_v12 = vrot.slane %v2343_v25, %v6788_v35  ;;  %v2191_v45 = vpop.permute.xlu1 %2190  ;;  %v2276_v52 = vrot.slane %v2260_v22, %v6788_v35  ;;  %v2283_v50 = vrot.slane %v2267_v29, %v6788_v35 }
 0x232   :  { %v2290_v34 = vrot.slane %v2268_v24, %v6788_v35  ;;  %v2211_v42 = vsel %vm1424_vm2, %v2167_v48, %v2191_v45  ;;  %v2157_v38 = vpop.permute.xlu0 %2156  ;;  %v2310_v14 = vrot.slane %v2302_v16, %v6788_v35  ;;  %v2317_v37 = vrot.slane %v2303_v41, %v6788_v35 }
 0x233   :  { %v2358_v15 = vcombine.high %v2350_v18, %v2350_v18  ;;  %v2359_v21 = vcombine.high %v2357_v12, %v2357_v12  ;;  %v2366_v40 = vrot.slane %v2350_v18, %v6788_v35  ;;  %v2373_v19 = vrot.slane %v2357_v12, %v6788_v35 }
 0x234   :  { %v2199_v56 = vsel %vm1424_vm2, %v5884_v43, %v2157_v38  ;;  %v2297_v36 = vrot.slane %v2269_v23, %v6788_v35  ;;  %v2318_v51 = vcombine.high %v2310_v14, %v2310_v14  ;;  %v2332_v60 = vrot.slane %v2317_v37, %v6788_v35 }
 0x235   :  { %v2380_v17 = vrot.slane %v2358_v15, %v6788_v35  ;;  %v2387_v11 = vrot.slane %v2359_v21, %v6788_v35  ;;  %v2388_v47 = vcombine.high %v2366_v40, %v2366_v40  ;;  %v2392_v57 = vcombine.low %v2199_v56, %v2211_v42 }
 0x236   :  { %v2389_v28 = vcombine.high %v2373_v19, %v2373_v19  ;;  %v2325_v61 = vrot.slane %v2310_v14, %v6788_v35  ;;  %v2432_v2 = vcombine.low %v2276_v52, %v2290_v34  ;;  %v2339_v43 = vrot.slane %v2318_v51, %v6788_v35 }
 0x237   :  { %v2390_v4 = vcombine.high %v2380_v17, %v2380_v17  ;;  %v2501_v0 = vcombine.low %v2380_v17, %v2388_v47  ;;  %v2400_v32 = vrot.slane %v2392_v57, %v6788_v35  ;;  %v2391_v7 = vcombine.high %v2387_v11, %v2387_v11 }
 0x238   :  { %v4836_v3 = vcombine.high %v2276_v52, %v2290_v34  ;;  %v2434_v30 = vcombine.low %v2283_v50, %v2297_v36  ;;  %v4837_v59 = vcombine.high %v2283_v50, %v2297_v36  ;;  %v2498_v63 = vcombine.low %v2325_v61, %v2339_v43 }
 0x239   :  { %v4838_v31 = vcombine.high %v2325_v61, %v2339_v43  ;;  %v2500_v9 = vcombine.low %v2332_v60, %v2366_v40  ;;  %v2408_v10 = vcombine.high %v2400_v32, %v2400_v32  ;;  %v2415_v53 = vrot.slane %v2400_v32, %v6788_v35 }
 0x23a   :  { %v2442_v48 = vrot.slane %v2432_v2, %v6788_v35  ;;  %v2449_v5 = vrot.slane %v4836_v3, %v6788_v35  ;;  %v2456_v39 = vrot.slane %v2434_v30, %v6788_v35  ;;  %v2564_v49 = vcombine.low %v2390_v4, %v2373_v19 }
 0x23b   :  { %v2393_v54 = vcombine.high %v2199_v56, %v2211_v42  ;;  %v2429_v6 = vrot.slane %v2408_v10, %v6788_v35  ;;  %v2463_v27 = vrot.slane %v4837_v59, %v6788_v35  ;;  %v2430_v55 = vcombine.high %v2415_v53, %v2415_v53 }
 0x23c   :  { %v2465_v1 = vcombine.high %v2442_v48, %v2449_v5  ;;  %v2464_v13 = vcombine.low %v2442_v48, %v2449_v5  ;;  %v2508_v22 = vrot.slane %v2498_v63, %v6788_v35  ;;  %v2566_v29 = vcombine.low %v2391_v7, %v2415_v53 }
 0x23d   :  { %v2467_v8 = vcombine.high %v2456_v39, %v2463_v27  ;;  %v2466_v58 = vcombine.low %v2456_v39, %v2463_v27  ;;  %v2515_v33 = vrot.slane %v4838_v31, %v6788_v35  ;;  %v2567_v25 = vcombine.low %v2429_v6, %v2430_v55 }
 0x23e   :  { %v2481_v26 = vrot.slane %v2465_v1, %v6788_v35  ;;  %v2474_v62 = vrot.slane %v2464_v13, %v6788_v35  ;;  %v2522_v24 = vrot.slane %v2500_v9, %v6788_v35  ;;  %v2565_v23 = vcombine.low %v2387_v11, %v2389_v28 }
 0x23f   :  { %v2495_v18 = vrot.slane %v2467_v8, %v6788_v35  ;;  %v2488_v12 = vrot.slane %v2466_v58, %v6788_v35  ;;  %v2529_v16 = vrot.slane %v2501_v0, %v6788_v35  ;;  %v2407_v41 = vrot.slane %v2393_v54, %v6788_v35 }
 0x240   :  { %v2531_v45 = vcombine.high %v2508_v22, %v2515_v33  ;;  %v2530_v34 = vcombine.low %v2508_v22, %v2515_v33  ;;  %v2574_v21 = vrot.slane %v2564_v49, %v6788_v35  ;;  %v2588_v52 = vrot.slane %v2566_v29, %v6788_v35 }
 0x241   :  { %v2497_v42 = vcombine.low %v2481_v26, %v2495_v18  ;;  %v2496_v38 = vcombine.low %v2474_v62, %v2488_v12  ;;  %v2533_v15 = vcombine.high %v2522_v24, %v2529_v16  ;;  %v2532_v19 = vcombine.low %v2522_v24, %v2529_v16  ;;  %v4969_v24 = vld [vmem:[%s6682_s7] sm:$0xff]  }
 0x242   :  { %v2547_v40 = vrot.slane %v2531_v45, %v6788_v35  ;;  %v2595_v14 = vrot.slane %v2567_v25, %v6788_v35  ;;  %v2431_v37 = vcombine.high %v2429_v6, %v2429_v6  ;;  %v2581_v36 = vrot.slane %v2565_v23, %v6788_v35  ;;  %v4970_v23 = vld [vmem:[%s6682_s7 + $0x8] sm:$0xff]   ;;  %4930 = vmatprep.subr.bf16.mxu0 %v4969_v24 }
 0x243   :  { %2789 = vmatprep.mubr.bf16.mxu1 %v2497_v42  ;;  %v2561_v56 = vrot.slane %v2533_v15, %v6788_v35  ;;  %v2422_v11 = vrot.slane %v2407_v41, %v6788_v35  ;;  %v2540_v60 = vrot.slane %v2530_v34, %v6788_v35  ;;  %v2554_v57 = vrot.slane %v2532_v19, %v6788_v35 }
 0x244   :  { %2790 = vmatmul.mubr.bf16.vlgmr.msra.gmra.mrb[0].mxu1 %v2496_v38  ;;  %v2599_v17 = vcombine.high %v2588_v52, %v2595_v14  ;;  %v2597_v51 = vcombine.high %v2574_v21, %v2581_v36  ;;  %v2598_v4 = vcombine.low %v2588_v52, %v2595_v14  ;;  %v2596_v32 = vcombine.low %v2574_v21, %v2581_v36  ;;  %v4971_v14 = vld [vmem:[%s6682_s7 + $0x10] sm:$0xff]  }
 0x245   :  { %v2563_v47 = vcombine.low %v2547_v40, %v2561_v56  ;;  %v2630_v50 = vcombine.low %v2431_v37, %v2422_v11  ;;  %v2562_v2 = vcombine.low %v2540_v60, %v2554_v57  ;;  %v5006_v9 = vmov 1983009808   ;;  %4931 = vmatpush3.bf16.msra.mxu0 %v4969_v24 }
 0x246   :  { %v2627_v28 = vrot.slane %v2599_v17, %v6788_v35  ;;  %v2613_v61 = vrot.slane %v2597_v51, %v6788_v35  ;;  %v2620_v7 = vrot.slane %v2598_v4, %v6788_v35  ;;  %v2606_v30 = vrot.slane %v2596_v32, %v6788_v35  ;;  %4932 = vmatprep.subr.bf16.mxu0 %v4970_v23  ;;  %v4972_v4 = vld [vmem:[%s6682_s7 + $0x18] sm:$0xff]  }
 0x247   :  { %2797 = vmatprep.mubr.bf16.mxu1 %v2563_v47  ;;  %v2637_v43 = vrot.slane %v2630_v50, %v6788_v35  ;;  %v2830_v10 = vunpack.c.l.s4 %v5006_v9 }
 0x248   :  { %v2629_v0 = vcombine.low %v2613_v61, %v2627_v28  ;;  %v2628_v59 = vcombine.low %v2606_v30, %v2620_v7 }
 0x249   :  { %v2638_v3 = vcombine.high %v2637_v43, %v2637_v43  ;;  %v2645_v31 = vrot.slane %v2637_v43, %v6788_v35  ;;  %v2831_v53 = vunpack.c.0.s8 %v2830_v10  ;;  %4933 = vmatpush3.bf16.msra.mxu0 %v4970_v23 }
 0x24a   :  { %4934 = vmatprep.subr.bf16.mxu0 %v4971_v14 }
 0x24b   :  { %v2652_v63 = vrot.slane %v2638_v3, %v6788_v35  ;;  %v5992_v5 = vsub.s32 %v2831_v53, %v6795_v20 }
 0x24c   :  { %2798 = vmatmul.mubr.bf16.gmra.mrb[4].mxu1 %v2562_v2 }
 0x24d   :  { %2805 = vmatprep.mubr.bf16.mxu1 %v2629_v0  ;;  %4935 = vmatpush3.bf16.msra.mxu0 %v4971_v14 }
 0x24e   :  { %4936 = vmatprep.subr.bf16.mxu0 %v4972_v4 }
 0x251   :  { %4937 = vmatpush3.bf16.msra.mxu0 %v4972_v4 }
 0x254   :  { %2806 = vmatmul.mubr.bf16.gmra.mrb[8].mxu1 %v2628_v59 }
 0x255   :  { %2813 = vmatprep.mubr.bf16.mxu1 %v2652_v63 }
 0x25c   :  { %2814 = vmatmul.mubr.bf16.gmra.mrb[12].mxu1 %v2645_v31 }
 0x317   :  { %v4888_v48 = vpop.f32.mrb[0].mxu1 }
 0x318   :  { %v4889_v39 = vpop.f32.mrb[1].mxu1 }
 0x319   :  { %v4890_v49 = vadd.f32 %v4889_v39, %v4888_v48  ;;  %v4891_v54 = vpop.f32.mrb[2].mxu1 }
 0x31a   :  { %v4892_v6 = vpop.f32.mrb[3].mxu1 }
 0x31b   :  { %v2828_v27 = vcombine.high %v4890_v49, %v4890_v49  ;;  %v5995_v55 = vrot.slane %v4890_v49, %v5992_v5  ;;  %v4893_v1 = vadd.f32 %v4892_v6, %v4891_v54 }
 0x31d   :  { %v5998_v13 = vrot.slane %v2828_v27, %v5992_v5  ;;  %v6002_v22 = vcombine.high %v5995_v55, %v5995_v55  ;;  %v2845_v29 = vcombine.high %v4893_v1, %v4893_v1  ;;  %v6005_v20 = vrot.slane %v4893_v1, %v5992_v5 }
 0x31f   :  { %v6009_v8 = vcombine.high %v5998_v13, %v5998_v13  ;;  %v2966_v58 = vcombine.low %v5995_v55, %v6002_v22  ;;  %v6014_v33 = vrot.slane %v2845_v29, %v5992_v5  ;;  %v6018_v25 = vcombine.high %v6005_v20, %v6005_v20  ;;  %v4894_v26 = vpop.f32.mrb[4].mxu1 }
 0x320   :  { %v4895_v62 = vpop.f32.mrb[5].mxu1 }
 0x321   :  { %v2967_v18 = vcombine.low %v5998_v13, %v6009_v8  ;;  %v6030_v12 = vcombine.high %v6014_v33, %v6014_v33  ;;  %v2983_v16 = vcombine.low %v6005_v20, %v6018_v25  ;;  %v4897_v41 = vpop.f32.mrb[6].mxu1  ;;  %v4896_v45 = vadd.f32 %v4895_v62, %v4894_v26 }
 0x322   :  { %v4898_v34 = vpop.f32.mrb[7].mxu1  ;;  %v2974_v42 = vrot.slane %v2966_v58, %v5992_v5 }
 0x323   :  { %v2981_v38 = vrot.slane %v2967_v18, %v5992_v5  ;;  %v2984_v15 = vcombine.low %v6014_v33, %v6030_v12  ;;  %v4899_v21 = vadd.f32 %v4898_v34, %v4897_v41  ;;  %v2991_v40 = vrot.slane %v2983_v16, %v5992_v5 }
 0x324   :  { %v2862_v19 = vcombine.high %v4896_v45, %v4896_v45  ;;  %v6040_v52 = vrot.slane %v4896_v45, %v5992_v5 }
 0x325   :  { %v6045_v37 = vcombine.low %v2974_v42, %v2981_v38  ;;  %v2998_v56 = vrot.slane %v2984_v15, %v5992_v5  ;;  %v2879_v36 = vcombine.high %v4899_v21, %v4899_v21  ;;  %v6049_v17 = vrot.slane %v4899_v21, %v5992_v5 }
 0x326   :  { %v6052_v11 = vrot.slane %v2862_v19, %v5992_v5  ;;  %v6056_v47 = vcombine.high %v6040_v52, %v6040_v52 }
 0x327   :  { %v6058_v51 = vcombine.low %v2991_v40, %v2998_v56  ;;  %v6061_v60 = vrot.slane %v2879_v36, %v5992_v5  ;;  %v6065_v57 = vcombine.high %v6049_v17, %v6049_v17  ;;  %v4900_v50 = vpop.f32.mrb[8].mxu1  ;;  %v3090_v0 = vsel %vm1424_vm2, %v6045_v37, 0.0 }
 0x328   :  { %v6069_v28 = vcombine.high %v6052_v11, %v6052_v11  ;;  %v3000_v61 = vcombine.low %v6040_v52, %v6056_v47  ;;  %v4901_v2 = vpop.f32.mrb[9].mxu1  ;;  %v6108_v29 = vrot.slane %v6049_v17, %v5992_v5 }
 0x329   :  { %v3091_v43 = vsel %vm1424_vm2, %v6058_v51, 0.0  ;;  %v4902_v7 = vadd.f32 %v4901_v2, %v4900_v50  ;;  %v4903_v3 = vpop.f32.mrb[10].mxu1  ;;  %v3024_v31 = vcombine.low %v6065_v57, %v6061_v60  ;;  %v6088_v9 = vcombine.high %v6061_v60, %v6061_v60 }
 0x32a   :  { %v3001_v30 = vcombine.low %v6052_v11, %v6069_v28  ;;  %v3092_v59 = vadd.f32 %v3091_v43, %v3090_v0  ;;  %v4904_v63 = vpop.f32.mrb[11].mxu1  ;;  %v3008_v48 = vrot.slane %v3000_v61, %v5992_v5  ;;  %v3096_v14 = vsel %vm3095_vm7, %v6108_v29, 0.0 }
 0x32b   :  { %v2896_v10 = vcombine.high %v4902_v7, %v4902_v7  ;;  %v6091_v53 = vrot.slane %v4902_v7, %v5992_v5  ;;  %v4905_v49 = vadd.f32 %v4904_v63, %v4903_v3  ;;  %v3032_v62 = vrot.slane %v3024_v31, %v5992_v5 }
 0x32c   :  { %v3015_v39 = vrot.slane %v3001_v30, %v5992_v5 }
 0x32d   :  { %v6096_v54 = vrot.slane %v2896_v10, %v5992_v5  ;;  %v6100_v6 = vcombine.high %v6091_v53, %v6091_v53  ;;  %v3025_v27 = vcombine.low %v6088_v9, %v6091_v53  ;;  %v2913_v58 = vcombine.high %v4905_v49, %v4905_v49 }
 0x32e   :  { %v6104_v1 = vcombine.low %v3008_v48, %v3015_v39  ;;  %v6111_v26 = vrot.slane %v4905_v49, %v5992_v5 }
 0x32f   :  { %v3039_v24 = vrot.slane %v3025_v27, %v5992_v5  ;;  %v3041_v23 = vcombine.low %v6100_v6, %v6096_v54  ;;  %v6119_v18 = vcombine.high %v6096_v54, %v6096_v54  ;;  %v4906_v16 = vpop.f32.mrb[12].mxu1  ;;  %v6126_v34 = vrot.slane %v2913_v58, %v5992_v5 }
 0x330   :  { %v3093_v41 = vsel %vm1424_vm2, %v6104_v1, 0.0  ;;  %v3365_v45 = vpack.c.bf16 %v6108_v29, %v6104_v1  ;;  %v6130_v42 = vcombine.high %v6111_v26, %v6111_v26  ;;  %v4907_v38 = vpop.f32.mrb[13].mxu1  ;;  %v6810_v29 = vmov 0  }
 0x331   :  { %v3094_v15 = vadd.f32 %v3093_v41, %v3092_v59  ;;  %v6132_v21 = vcombine.low %v3032_v62, %v3039_v24  ;;  %v3042_v40 = vcombine.low %v6119_v18, %v6111_v26  ;;  %v4909_v19 = vpop.f32.mrb[14].mxu1  ;;  %v4908_v56 = vadd.f32 %v4907_v38, %v4906_v16 }
 0x332   :  { %v4910_v36 = vpop.f32.mrb[15].mxu1  ;;  %v3049_v61 = vrot.slane %v3041_v23, %v5992_v5  ;;  %v3058_v0 = vcombine.low %v6130_v42, %v6126_v34  ;;  %v2929_v43 = vcombine.high %v6126_v34, %v6126_v34 }
 0x333   :  { %v3097_v50 = vadd.f32 %v3096_v14, %v3094_v15  ;;  %v3098_v2 = vsel %vm1424_vm2, %v6132_v21, 0.0  ;;  %v3056_v4 = vrot.slane %v3042_v40, %v5992_v5  ;;  %v2936_v7 = vrot.slane %v4908_v56, %v5992_v5 }
 0x334   :  { %v3066_v48 = vrot.slane %v3058_v0, %v5992_v5 }
 0x335   :  { %v3099_v3 = vadd.f32 %v3098_v2, %v3097_v50  ;;  %v6147_v30 = vcombine.low %v3049_v61, %v3056_v4  ;;  %v2937_v59 = vcombine.high %v2936_v7, %v2936_v7  ;;  %v3059_v63 = vcombine.low %v2929_v43, %v2936_v7 }
 0x337   :  { %v3100_v31 = vsel %vm1424_vm2, %v6147_v30, 0.0  ;;  %v3366_v10 = vpack.c.bf16 %v6147_v30, %v6132_v21  ;;  %v3073_v49 = vrot.slane %v3059_v63, %v5992_v5  ;;  %v6158_v58 = vrot.slane %v2937_v59, %v5992_v5 }
 0x338   :  { %v3101_v39 = vadd.f32 %v3100_v31, %v3099_v3 }
 0x339   :  { %v6155_v27 = vcombine.low %v3066_v48, %v3073_v49  ;;  %v3104_v16 = vsel %vm3095_vm7, %v6158_v58, 0.0 }
 0x33b   :  { %v3102_v62 = vsel %vm1424_vm2, %v6155_v27, 0.0 }
 0x33c   :  { %v3103_v23 = vadd.f32 %v3102_v62, %v3101_v39 }
 0x33e   :  { %v3105_v41 = vadd.f32 %v3104_v16, %v3103_v23 }
 0x340   :  { %v3106_v38 = vrot.slane %v3105_v41, 4 }
 0x342   :  { %v3107_v15 = vadd.f32 %v3106_v38, %v3105_v41 }
 0x344   :  { %v3108_v40 = vrot.slane %v3107_v15, 2 }
 0x346   :  { %v3109_v19 = vadd.f32 %v3108_v40, %v3107_v15 }
 0x348   :  { %v3110_v14 = vrot.slane %v3109_v19, 1 }
 0x34a   :  { %v3111_v56 = vadd.f32 %v3110_v14, %v3109_v19 }
 0x34c   :  { %v6166_v36 = vmul.f32 0.01923077, %v3111_v56 }
 0x34e   :  { %v3114_v50 = vcombine.high %v6166_v36, %v6166_v36  ;;  %v3121_v61 = vrot.slane %v6166_v36, %v5992_v5 }
 0x350   :  { %v3128_v2 = vrot.slane %v3114_v50, %v5992_v5  ;;  %v3129_v4 = vcombine.high %v3121_v61, %v3121_v61  ;;  %v3135_v0 = vsub.f32 %v5995_v55, %v3121_v61  ;;  %v3139_v3 = vsub.f32 %v6005_v20, %v3121_v61 }
 0x351   :  { %v3143_v63 = vsub.f32 %v6040_v52, %v3121_v61  ;;  %v3147_v31 = vsub.f32 %v6049_v17, %v3121_v61  ;;  %v3148_v48 = vsub.f32 %v6065_v57, %v3121_v61  ;;  %v3152_v39 = vsub.f32 %v6100_v6, %v3121_v61 }
 0x352   :  { %v3130_v49 = vcombine.high %v3128_v2, %v3128_v2  ;;  %v3136_v62 = vsub.f32 %v6002_v22, %v3129_v4  ;;  %v3137_v23 = vsub.f32 %v5998_v13, %v3128_v2  ;;  %v3140_v16 = vsub.f32 %v6018_v25, %v3129_v4 }
 0x353   :  { %v3141_v41 = vsub.f32 %v6014_v33, %v3128_v2  ;;  %v3144_v55 = vsub.f32 %v6056_v47, %v3129_v4  ;;  %v3145_v20 = vsub.f32 %v6052_v11, %v3128_v2  ;;  %v3149_v52 = vsub.f32 %v6061_v60, %v3129_v4 }
 0x354   :  { %v3138_v17 = vsub.f32 %v6009_v8, %v3130_v49  ;;  %v3142_v57 = vsub.f32 %v6030_v12, %v3130_v49  ;;  %v3146_v6 = vsub.f32 %v6069_v28, %v3130_v49  ;;  %v3150_v22 = vsub.f32 %v6088_v9, %v3128_v2 }
 0x355   :  { %v3151_v13 = vsub.f32 %v6091_v53, %v3130_v49  ;;  %v3153_v25 = vsub.f32 %v6096_v54, %v3129_v4  ;;  %v3154_v33 = vsub.f32 %v6119_v18, %v3128_v2  ;;  %v3155_v47 = vsub.f32 %v6111_v26, %v3130_v49 }
 0x356   :  { %v3156_v11 = vsub.f32 %v6130_v42, %v3121_v61  ;;  %v3157_v60 = vsub.f32 %v6126_v34, %v3129_v4  ;;  %v3158_v38 = vsub.f32 %v2929_v43, %v3128_v2  ;;  %v3159_v8 = vsub.f32 %v2936_v7, %v3130_v49 }
 0x357   :  { %v3160_v15 = vsub.f32 %v2937_v59, %v3121_v61  ;;  %v3161_v12 = vmul.f32 %v3135_v0, %v3135_v0  ;;  %v3162_v40 = vmul.f32 %v3136_v62, %v3136_v62  ;;  %v3163_v28 = vmul.f32 %v3137_v23, %v3137_v23 }
 0x358   :  { %v3164_v19 = vmul.f32 %v3138_v17, %v3138_v17  ;;  %v3165_v9 = vmul.f32 %v3139_v3, %v3139_v3  ;;  %v3166_v14 = vmul.f32 %v3140_v16, %v3140_v16  ;;  %v3167_v53 = vmul.f32 %v3141_v41, %v3141_v41 }
 0x359   :  { %v3168_v56 = vmul.f32 %v3142_v57, %v3142_v57  ;;  %v3169_v54 = vmul.f32 %v3143_v63, %v3143_v63  ;;  %v3170_v50 = vmul.f32 %v3144_v55, %v3144_v55  ;;  %v3171_v18 = vmul.f32 %v3145_v20, %v3145_v20 }
 0x35a   :  { %v3172_v46 = vmul.f32 %v3146_v6, %v3146_v6  ;;  %v3173_v26 = vmul.f32 %v3147_v31, %v3147_v31  ;;  %v3174_v32 = vmul.f32 %v3148_v48, %v3148_v48  ;;  %v3175_v42 = vmul.f32 %v3149_v52, %v3149_v52 }
 0x35b   :  { %v3176_v24 = vmul.f32 %v3150_v22, %v3150_v22  ;;  %v3177_v34 = vmul.f32 %v3151_v13, %v3151_v13  ;;  %v3178_v43 = vmul.f32 %v3152_v39, %v3152_v39  ;;  %v3179_v7 = vmul.f32 %v3153_v25, %v3153_v25 }
 0x35c   :  { %v3180_v59 = vmul.f32 %v3154_v33, %v3154_v33  ;;  %v3181_v61 = vmul.f32 %v3155_v47, %v3155_v47  ;;  %v3182_v2 = vmul.f32 %v3156_v11, %v3156_v11  ;;  %v3183_v4 = vmul.f32 %v3157_v60, %v3157_v60 }
 0x35d   :  { %v3213_v0 = vcombine.low %v3161_v12, %v3162_v40  ;;  %v3214_v3 = vcombine.low %v3163_v28, %v3164_v19  ;;  %v3230_v49 = vcombine.low %v3165_v9, %v3166_v14  ;;  %v3231_v62 = vcombine.low %v3167_v53, %v3168_v56 }
 0x35e   :  { %v3247_v23 = vcombine.low %v3169_v54, %v3170_v50  ;;  %v3184_v63 = vmul.f32 %v3158_v38, %v3158_v38  ;;  %v3185_v16 = vmul.f32 %v3159_v8, %v3159_v8  ;;  %v3248_v41 = vcombine.low %v3171_v18, %v3172_v46 }
 0x35f   :  { %v3271_v55 = vcombine.low %v3174_v32, %v3175_v42  ;;  %v3221_v31 = vrot.slane %v3213_v0, %v5992_v5  ;;  %v3228_v48 = vrot.slane %v3214_v3, %v5992_v5  ;;  %v3238_v39 = vrot.slane %v3230_v49, %v5992_v5 }
 0x360   :  { %v3245_v20 = vrot.slane %v3231_v62, %v5992_v5  ;;  %v3255_v52 = vrot.slane %v3247_v23, %v5992_v5  ;;  %v3262_v17 = vrot.slane %v3248_v41, %v5992_v5  ;;  %v3272_v57 = vcombine.low %v3176_v24, %v3177_v34 }
 0x361   :  { %v3288_v6 = vcombine.low %v3178_v43, %v3179_v7  ;;  %v3229_v22 = vcombine.low %v3221_v31, %v3228_v48  ;;  %v3289_v25 = vcombine.low %v3180_v59, %v3181_v61  ;;  %v3305_v33 = vcombine.low %v3182_v2, %v3183_v4 }
 0x362   :  { %v3246_v13 = vcombine.low %v3238_v39, %v3245_v20  ;;  %v3263_v46 = vcombine.low %v3255_v52, %v3262_v17  ;;  %v3279_v32 = vrot.slane %v3271_v55, %v5992_v5  ;;  %v3286_v47 = vrot.slane %v3272_v57, %v5992_v5  ;;  %v2964_v55 = vld [vmem:[%s6680_s5] sm:$0x1] }
 0x363   :  { %v3306_v11 = vcombine.low %v3184_v63, %v3185_v16  ;;  %v3270_v60 = vrot.slane %v3173_v26, %v5992_v5  ;;  %v3296_v38 = vrot.slane %v3288_v6, %v5992_v5  ;;  %v3303_v8 = vrot.slane %v3289_v25, %v5992_v5  ;;  %v2965_v39 = vld [vmem:[%s6681_s6] sm:$0x1] }
 0x364   :  { %v3337_v12 = vsel %vm1424_vm2, %v3229_v22, 0.0  ;;  %v3287_v24 = vcombine.low %v3279_v32, %v3286_v47  ;;  %v3313_v40 = vrot.slane %v3305_v33, %v5992_v5  ;;  %v3338_v19 = vsel %vm1424_vm2, %v3246_v13, 0.0 }
 0x365   :  { %v3320_v28 = vrot.slane %v3306_v11, %v5992_v5  ;;  %v3304_v9 = vcombine.low %v3296_v38, %v3303_v8  ;;  %v3339_v14 = vadd.f32 %v3338_v19, %v3337_v12  ;;  %v3340_v56 = vsel %vm1424_vm2, %v3263_v46, 0.0 }
 0x366   :  { %v3186_v50 = vmul.f32 %v3160_v15, %v3160_v15  ;;  %v3342_v18 = vsel %vm3095_vm7, %v3270_v60, 0.0  ;;  %v3344_v42 = vsel %vm1424_vm2, %v3287_v24, 0.0  ;;  %v6808_v33 = vpack.c.bf16 %v6158_v58, %v6155_v27 }
 0x367   :  { %v3321_v53 = vcombine.low %v3313_v40, %v3320_v28  ;;  %v3341_v54 = vadd.f32 %v3340_v56, %v3339_v14  ;;  %v3346_v7 = vsel %vm1424_vm2, %v3304_v9, 0.0 }
 0x368   :  { %v3328_v43 = vrot.slane %v3186_v50, %v5992_v5 }
 0x369   :  { %v3343_v26 = vadd.f32 %v3342_v18, %v3341_v54  ;;  %v3348_v61 = vsel %vm1424_vm2, %v3321_v53, 0.0 }
 0x36a   :  { %v3350_v4 = vsel %vm3095_vm7, %v3328_v43, 0.0 }
 0x36b   :  { %v3345_v34 = vadd.f32 %v3344_v42, %v3343_v26 }
 0x36d   :  { %v3347_v59 = vadd.f32 %v3346_v7, %v3345_v34 }
 0x36f   :  { %v3349_v2 = vadd.f32 %v3348_v61, %v3347_v59 }
 0x371   :  { %v3351_v0 = vadd.f32 %v3350_v4, %v3349_v2 }
 0x373   :  { %v3352_v3 = vrot.slane %v3351_v0, 4 }
 0x375   :  { %v3353_v49 = vadd.f32 %v3352_v3, %v3351_v0 }
 0x377   :  { %v3354_v15 = vrot.slane %v3353_v49, 2 }
 0x379   :  { %v3355_v62 = vadd.f32 %v3354_v15, %v3353_v49 }
 0x37b   :  { %v3356_v23 = vrot.slane %v3355_v62, 1 }
 0x37d   :  { %v3357_v63 = vadd.f32 %v3356_v23, %v3355_v62 }
 0x37f   :  { %v3358_v16 = vmul.f32 0.01923077, %v3357_v63 }
 0x381   :  { %v3359_v41 = vadd.f32 1e-05, %v3358_v16 }
 0x383   :  { %4975 = vrsqrt.f32 %v3359_v41 }
 0x38d   :  { %v4976_v31 = vpop.eup %4975 }
 0x38e   :  { %v3361_v48 = vmul.f32 %v4976_v31, %v2964_v55 }
 0x390   :  { %v3362_v20 = vmul.f32 %v3361_v48, %v6166_v36  ;;  %v3368_v52 = vpack.c.bf16 %v3361_v48, %v3361_v48  ;;  %v6809_v36 = vpack.c.bf16 %v6058_v51, %v6045_v37 }
 0x392   :  { %v3363_v17 = vsub.f32 %v2965_v39, %v3362_v20  ;;  %v3370_v57 = vpack.i.b16 %v3368_v52, %v3368_v52 }
 0x394   :  { %v3375_v6 = vrot.slane %v3370_v57, %v5852_v44  ;;  %v3380_v22 = vpack.c.bf16 %v3363_v17, %v3363_v17 }
 0x396   :  { %v3377_v13 = vmul.bf16 %v3375_v6, %v3365_v45  ;;  %v3378_v25 = vmul.bf16 %v3375_v6, %v3366_v10  ;;  %v3379_v46 = vmul.bf16 %v3375_v6, %v6808_v33  ;;  %v3382_v32 = vpack.i.b16 %v3380_v22, %v3380_v22 }
 0x397   :  { %v3376_v47 = vmul.bf16 %v3375_v6, %v6809_v36 }
 0x398   :  { %v3387_v11 = vrot.slane %v3382_v32, %v5852_v44 }
 0x39a   :  { %v3389_v60 = vadd.bf16 %v3387_v11, %v3377_v13  ;;  %v3390_v38 = vadd.bf16 %v3387_v11, %v3378_v25  ;;  %v3391_v8 = vadd.bf16 %v3387_v11, %v3379_v46  ;;  %v3388_v1 = vadd.bf16 %v3387_v11, %v3376_v47 }
 0x39c   :  { %v6240_v45 = vmax.bf16 %v6810_v29, %v3391_v8  ;;  %v3392_v21 = vmax.bf16 %v6810_v29, %v3388_v1  ;;  %v3393_v30 = vmax.bf16 %v6810_v29, %v3389_v60  ;;  %v3394_v10 = vmax.bf16 %v6810_v29, %v3390_v38 }
 0x39e   :  { %v3552_v27 = vrot.slane %v6240_v45, %v6788_v35  ;;  %v3408_v37 = vcombine.high %v3392_v21, %v3392_v21  ;;  %v3415_v51 = vrot.slane %v3392_v21, %v6788_v35  ;;  %v3457_v58 = vcombine.high %v3393_v30, %v3393_v30 }
 0x39f   :  { %v3464_v12 = vrot.slane %v3393_v30, %v6788_v35  ;;  %v3503_v24 = vrot.slane %v3394_v10, %v6788_v35  ;;  %v3496_v40 = vcombine.high %v3394_v10, %v3394_v10  ;;  %v3545_v28 = vcombine.high %v6240_v45, %v6240_v45 }
 0x3a0   :  { %v3422_v19 = vrot.slane %v3408_v37, %v6788_v35  ;;  %v3423_v9 = vcombine.high %v3415_v51, %v3415_v51  ;;  %v3431_v14 = vrot.slane %v3415_v51, %v6788_v35  ;;  %v3471_v53 = vrot.slane %v3457_v58, %v6788_v35 }
 0x3a1   :  { %v3472_v56 = vcombine.high %v3464_v12, %v3464_v12  ;;  %v3479_v54 = vrot.slane %v3464_v12, %v6788_v35  ;;  %v3511_v50 = vcombine.high %v3503_v24, %v3503_v24  ;;  %v3519_v18 = vrot.slane %v3503_v24, %v6788_v35 }
 0x3a2   :  { %v3424_v26 = vcombine.high %v3422_v19, %v3422_v19  ;;  %v3438_v42 = vrot.slane %v3422_v19, %v6788_v35  ;;  %v3445_v34 = vrot.slane %v3423_v9, %v6788_v35  ;;  %v3486_v43 = vrot.slane %v3471_v53, %v6788_v35 }
 0x3a3   :  { %v3493_v7 = vrot.slane %v3472_v56, %v6788_v35  ;;  %v3533_v59 = vrot.slane %v3511_v50, %v6788_v35  ;;  %v3541_v61 = vcombine.high %v3519_v18, %v3519_v18  ;;  %v3510_v2 = vrot.slane %v3496_v40, %v6788_v35 }
 0x3a4   :  { %v3452_v4 = vrot.slane %v3424_v26, %v6788_v35  ;;  %v3584_v0 = vcombine.low %v3431_v14, %v3445_v34  ;;  %v4855_v3 = vcombine.high %v3431_v14, %v3445_v34  ;;  %v3635_v49 = vcombine.low %v3486_v43, %v3519_v18 }
 0x3a5   :  { %v3633_v15 = vcombine.low %v3479_v54, %v3493_v7  ;;  %v4857_v62 = vcombine.high %v3479_v54, %v3493_v7  ;;  %v3636_v23 = vcombine.low %v3533_v59, %v3541_v61  ;;  %v3512_v63 = vcombine.high %v3510_v2, %v3510_v2 }
 0x3a6   :  { %v3586_v16 = vcombine.low %v3438_v42, %v3452_v4  ;;  %v4856_v41 = vcombine.high %v3438_v42, %v3452_v4  ;;  %v3594_v55 = vrot.slane %v3584_v0, %v6788_v35  ;;  %v3601_v31 = vrot.slane %v4855_v3, %v6788_v35 }
 0x3a7   :  { %v3643_v48 = vrot.slane %v3633_v15, %v6788_v35  ;;  %v3650_v39 = vrot.slane %v4857_v62, %v6788_v35  ;;  %v3657_v20 = vrot.slane %v3635_v49, %v6788_v35  ;;  %v3664_v52 = vrot.slane %v3636_v23, %v6788_v35 }
 0x3a8   :  { %v3608_v17 = vrot.slane %v3586_v16, %v6788_v35  ;;  %v3615_v57 = vrot.slane %v4856_v41, %v6788_v35  ;;  %v3616_v6 = vcombine.low %v3594_v55, %v3601_v31  ;;  %v3526_v22 = vrot.slane %v3510_v2, %v6788_v35 }
 0x3a9   :  { %v3665_v13 = vcombine.low %v3643_v48, %v3650_v39  ;;  %v3666_v25 = vcombine.low %v3657_v20, %v3664_v52  ;;  %v3540_v33 = vrot.slane %v3512_v63, %v6788_v35  ;;  %v3543_v46 = vcombine.high %v3533_v59, %v3533_v59 }
 0x3aa   :  { %v3617_v32 = vcombine.low %v3608_v17, %v3615_v57  ;;  %v3624_v36 = vrot.slane %v3616_v6, %v6788_v35  ;;  %v3542_v47 = vcombine.high %v3526_v22, %v3526_v22  ;;  %v3560_v11 = vcombine.high %v3552_v27, %v3552_v27 }
 0x3ab   :  { %v3673_v60 = vrot.slane %v3665_v13, %v6788_v35  ;;  %v3680_v38 = vrot.slane %v3666_v25, %v6788_v35  ;;  %v3544_v8 = vcombine.high %v3540_v33, %v3540_v33  ;;  %v3567_v1 = vrot.slane %v3552_v27, %v6788_v35 }
 0x3ac   :  { %v3631_v29 = vrot.slane %v3617_v32, %v6788_v35  ;;  %v3581_v45 = vrot.slane %v3560_v11, %v6788_v35  ;;  %v3682_v21 = vcombine.low %v3543_v46, %v3526_v22  ;;  %v3683_v30 = vcombine.low %v3540_v33, %v3542_v47 }
 0x3ad   :  { %v3681_v10 = vcombine.low %v3673_v60, %v3680_v38  ;;  %v3582_v37 = vcombine.high %v3567_v1, %v3567_v1  ;;  %v3684_v51 = vcombine.low %v3544_v8, %v3567_v1  ;;  %v3559_v58 = vrot.slane %v3545_v28, %v6788_v35 }
 0x3ae   :  { %v3632_v12 = vcombine.low %v3624_v36, %v3631_v29  ;;  %v3692_v24 = vrot.slane %v3682_v21, %v6788_v35  ;;  %v3699_v40 = vrot.slane %v3683_v30, %v6788_v35  ;;  %v3583_v19 = vcombine.high %v3581_v45, %v3581_v45 }
 0x3af   :  { %v3685_v9 = vcombine.low %v3581_v45, %v3582_v37  ;;  %v3706_v27 = vrot.slane %v3684_v51, %v6788_v35  ;;  %v3574_v14 = vrot.slane %v3559_v58, %v6788_v35 }
 0x3b0   :  { %4938 = vmatprep.mubr.msk.bf16.mxu0 %vm1424_vm2, %v3632_v12  ;;  %v3714_v56 = vcombine.low %v3692_v24, %v3699_v40 }
 0x3b1   :  { %4939 = vmatmul.mubr.msk.bf16.vlgmr.msra.gmra.mrb[8].mxu0 %vm1424_vm2, %v3681_v10  ;;  %v3713_v53 = vrot.slane %v3685_v9, %v6788_v35  ;;  %v3731_v54 = vcombine.low %v3583_v19, %v3574_v14 }
 0x3b2   :  { %v3722_v18 = vrot.slane %v3714_v56, %v6788_v35 }
 0x3b3   :  { %v3715_v28 = vcombine.low %v3706_v27, %v3713_v53  ;;  %v3738_v50 = vrot.slane %v3731_v54, %v6788_v35 }
 0x3b5   :  { %v3729_v26 = vrot.slane %v3715_v28, %v6788_v35  ;;  %v3745_v34 = vrot.slane %v3738_v50, %v6788_v35 }
 0x3b7   :  { %v3730_v42 = vcombine.low %v3722_v18, %v3729_v26 }
 0x3b9   :  { %4942 = vmatprep.mubr.msk.bf16.mxu0 %vm1424_vm2, %v3730_v42 }
 0x3ba   :  { %4943 = vmatmul.mubr.msk.bf16.gmra.mrb[12].mxu0 %vm1424_vm2, %v3745_v34 }
 0x484   :  { %v4940_v43 = vpop.f32.mrb[8].mxu0 }
 0x485   :  { %v3887_v7 = vcombine.high %v4940_v43, %v4940_v43  ;;  %v6295_v59 = vrot.slane %v4940_v43, %v5992_v5  ;;  %v3816_v61 = vpop.f32.mrb[9].mxu0 }
 0x486   :  { %v3853_v2 = vcombine.high %v3816_v61, %v3816_v61  ;;  %v6298_v4 = vrot.slane %v3816_v61, %v5992_v5  ;;  %v4941_v0 = vpop.f32.mrb[10].mxu0 }
 0x487   :  { %6811 = vst [vmem:[#allocation26_spill] sm:$0xff] %v6295_v59  ;;  %v6301_v3 = vrot.slane %v3887_v7, %v5992_v5  ;;  %v6305_v35 = vcombine.high %v6295_v59, %v6295_v59  ;;  %v3904_v49 = vcombine.high %v4941_v0, %v4941_v0  ;;  %v6308_v15 = vrot.slane %v4941_v0, %v5992_v5  ;;  %v3819_v62 = vpop.f32.mrb[11].mxu0 }
 0x488   :  { %v6311_v23 = vrot.slane %v3853_v2, %v5992_v5  ;;  %v6315_v63 = vcombine.high %v6298_v4, %v6298_v4  ;;  %v3870_v16 = vcombine.high %v3819_v62, %v3819_v62  ;;  %v6318_v41 = vrot.slane %v3819_v62, %v5992_v5 }
 0x489   :  { %6812 = vst [vmem:[#allocation20_spill] sm:$0xff] %v6301_v3  ;;  %6813 = vst [vmem:[#allocation28_spill] sm:$0xff] %v6305_v35  ;;  %v6322_v55 = vcombine.high %v6301_v3, %v6301_v3  ;;  %v4025_v20 = vcombine.low %v6295_v59, %v6305_v35  ;;  %v6340_v57 = vrot.slane %v3904_v49, %v5992_v5 }
 0x48a   :  { %6814 = vst [vmem:[#allocation29_spill] sm:$0xff] %v6308_v15  ;;  %6815 = vst [vmem:[#allocation32_spill] sm:$0xff] %v6311_v23  ;;  %v6326_v31 = vcombine.high %v6311_v23, %v6311_v23  ;;  %v3991_v48 = vcombine.low %v6298_v4, %v6315_v63  ;;  %v6331_v39 = vrot.slane %v3870_v16, %v5992_v5 }
 0x48b   :  { %6816 = vst [vmem:[#allocation33_spill] sm:$0xff] %v6318_v41  ;;  %6817 = vst [vmem:[#allocation30_spill] sm:$0xff] %v6322_v55  ;;  %v4026_v52 = vcombine.low %v6301_v3, %v6322_v55  ;;  %v6344_v6 = vcombine.high %v6308_v15, %v6308_v15  ;;  %v6348_v22 = vcombine.high %v6318_v41, %v6318_v41 }
 0x48c   :  { %6818 = vst [vmem:[#allocation31_spill] sm:$0xff] %v6326_v31  ;;  %6819 = vst [vmem:[#allocation10_spill] sm:$0xff] %v6331_v39  ;;  %v3992_v17 = vcombine.low %v6311_v23, %v6326_v31  ;;  %v6352_v13 = vcombine.high %v6331_v39, %v6331_v39  ;;  %v3999_v46 = vrot.slane %v3991_v48, %v5992_v5 }
 0x48d   :  { %6820 = vst [vmem:[#allocation15_spill] sm:$0xff] %v6348_v22  ;;  %v4944_v25 = vpop.f32.mrb[12].mxu0  ;;  %v4040_v33 = vrot.slane %v4026_v52, %v5992_v5  ;;  %v4008_v36 = vcombine.low %v6318_v41, %v6348_v22  ;;  %v4033_v1 = vrot.slane %v4025_v20, %v5992_v5  ;;  %v6367_v45 = vcombine.high %v6340_v57, %v6340_v57 }
 0x48e   :  { %6821 = vst [vmem:[#allocation12_spill] sm:$0xff] %v6352_v13  ;;  %v4006_v32 = vrot.slane %v3992_v17, %v5992_v5  ;;  %v3832_v47 = vpop.f32.mrb[13].mxu0  ;;  %v4009_v11 = vcombine.low %v6331_v39, %v6352_v13  ;;  %v4049_v21 = vcombine.low %v6344_v6, %v6340_v57  ;;  %v4048_v24 = vrot.slane %v6308_v15, %v5992_v5 }
 0x48f   :  { %v3921_v60 = vcombine.high %v3832_v47, %v3832_v47  ;;  %v6362_v38 = vrot.slane %v3832_v47, %v5992_v5  ;;  %v4945_v8 = vpop.f32.mrb[14].mxu0  ;;  %v4016_v10 = vrot.slane %v4008_v36, %v5992_v5  ;;  %v4041_v12 = vcombine.low %v4033_v1, %v4040_v33 }
 0x490   :  { %v4007_v29 = vcombine.low %v3999_v46, %v4006_v32  ;;  %v3835_v30 = vpop.f32.mrb[15].mxu0  ;;  %v4023_v37 = vrot.slane %v4009_v11, %v5992_v5  ;;  %v4057_v56 = vrot.slane %v4049_v21, %v5992_v5  ;;  %v6395_v54 = vrot.slane %v4944_v25, %v5992_v5 }
 0x491   :  { %v6374_v51 = vrot.slane %v3921_v60, %v5992_v5  ;;  %v6378_v58 = vcombine.high %v6362_v38, %v6362_v38  ;;  %v4050_v40 = vcombine.low %v6367_v45, %v6362_v38  ;;  %v3938_v19 = vcombine.high %v3835_v30, %v3835_v30 }
 0x492   :  { %v4024_v9 = vcombine.low %v4016_v10, %v4023_v37  ;;  %v6391_v53 = vrot.slane %v3835_v30, %v5992_v5  ;;  %v4116_v18 = vsel %vm4115_vm8, %v4007_v29, 0.0  ;;  %v4119_v43 = vsel %vm4115_vm8, %v4041_v12, 0.0 }
 0x493   :  { %v6386_v27 = vcombine.high %v6374_v51, %v6374_v51  ;;  %v4066_v14 = vcombine.low %v6378_v58, %v6374_v51  ;;  %v4064_v28 = vrot.slane %v4050_v40, %v5992_v5  ;;  %v6399_v50 = vrot.slane %v3938_v19, %v5992_v5 }
 0x494   :  { %v4117_v26 = vsel %vm4115_vm8, %v4024_v9, 0.0  ;;  %v6405_v42 = vcombine.high %v6391_v53, %v6391_v53  ;;  %v4122_v20 = vsel %vm4121_vm9, %v4048_v24, 0.0  ;;  %v6423_v52 = vcombine.high %v6395_v54, %v6395_v54 }
 0x495   :  { %v4067_v34 = vcombine.low %v6386_v27, %v6391_v53  ;;  %v4118_v7 = vadd.f32 %v4117_v26, %v4116_v18  ;;  %v6412_v61 = vcombine.high %v6399_v50, %v6399_v50  ;;  %v4065_v2 = vcombine.low %v4057_v56, %v4064_v28 }
 0x496   :  { %v4074_v0 = vrot.slane %v4066_v14, %v5992_v5  ;;  %v4083_v62 = vcombine.low %v6405_v42, %v6399_v50  ;;  %v4106_v11 = vrot.slane %v6423_v52, %v5992_v5 }
 0x497   :  { %v4081_v49 = vrot.slane %v4067_v34, %v5992_v5  ;;  %v4120_v16 = vadd.f32 %v4119_v43, %v4118_v7  ;;  %v4084_v48 = vcombine.low %v6412_v61, %v6395_v54  ;;  %v4124_v32 = vsel %vm4115_vm8, %v4065_v2, 0.0 }
 0x498   :  { %v4091_v33 = vrot.slane %v4083_v62, %v5992_v5  ;;  %v4130_v21 = vsel %vm4121_vm9, %v4106_v11, 0.0 }
 0x499   :  { %v4082_v17 = vcombine.low %v4074_v0, %v4081_v49  ;;  %v4123_v25 = vadd.f32 %v4122_v20, %v4120_v16  ;;  %v4098_v46 = vrot.slane %v4084_v48, %v5992_v5 }
 0x49b   :  { %v4125_v36 = vadd.f32 %v4124_v32, %v4123_v25  ;;  %v4099_v47 = vcombine.low %v4091_v33, %v4098_v46  ;;  %v4126_v60 = vsel %vm4115_vm8, %v4082_v17, 0.0 }
 0x49d   :  { %v4127_v8 = vadd.f32 %v4126_v60, %v4125_v36  ;;  %v4128_v1 = vsel %vm4115_vm8, %v4099_v47, 0.0 }
 0x49f   :  { %v4129_v29 = vadd.f32 %v4128_v1, %v4127_v8 }
 0x4a1   :  { %v4131_v30 = vadd.f32 %v4130_v21, %v4129_v29 }
 0x4a3   :  { %v4132_v10 = vrot.slane %v4131_v30, 4 }
 0x4a5   :  { %v4133_v37 = vadd.f32 %v4132_v10, %v4131_v30 }
 0x4a7   :  { %v4134_v12 = vrot.slane %v4133_v37, 2 }
 0x4a9   :  { %v4135_v24 = vadd.f32 %v4134_v12, %v4133_v37 }
 0x4ab   :  { %v4136_v40 = vrot.slane %v4135_v24, 1 }
 0x4ad   :  { %v4137_v19 = vadd.f32 %v4136_v40, %v4135_v24 }
 0x4af   :  { %v6433_v9 = vmul.f32 0.01923077, %v4137_v19 }
 0x4b1   :  { %v4140_v14 = vcombine.high %v6433_v9, %v6433_v9  ;;  %v6439_v56 = vrot.slane %v6433_v9, %v5992_v5 }
 0x4b3   :  { %v4154_v28 = vrot.slane %v4140_v14, %v5992_v5  ;;  %v4155_v18 = vcombine.high %v6439_v56, %v6439_v56  ;;  %v4161_v34 = vsub.f32 %v6298_v4, %v6439_v56  ;;  %v4165_v43 = vsub.f32 %v6318_v41, %v6439_v56 }
 0x4b4   :  { %v4169_v7 = vsub.f32 %v6295_v59, %v6439_v56  ;;  %v4173_v0 = vsub.f32 %v6308_v15, %v6439_v56  ;;  %v4174_v49 = vsub.f32 %v6344_v6, %v6439_v56  ;;  %v4178_v62 = vsub.f32 %v6378_v58, %v6439_v56 }
 0x4b5   :  { %v4156_v26 = vcombine.high %v4154_v28, %v4154_v28  ;;  %v4162_v2 = vsub.f32 %v6315_v63, %v4155_v18  ;;  %v4163_v16 = vsub.f32 %v6311_v23, %v4154_v28  ;;  %v4166_v48 = vsub.f32 %v6348_v22, %v4155_v18 }
 0x4b6   :  { %v4167_v20 = vsub.f32 %v6331_v39, %v4154_v28  ;;  %v4170_v17 = vsub.f32 %v6305_v35, %v4155_v18  ;;  %v4171_v46 = vsub.f32 %v6301_v3, %v4154_v28  ;;  %v4175_v32 = vsub.f32 %v6340_v57, %v4155_v18 }
 0x4b7   :  { %v4164_v25 = vsub.f32 %v6326_v31, %v4156_v26  ;;  %v4168_v33 = vsub.f32 %v6352_v13, %v4156_v26  ;;  %v4172_v36 = vsub.f32 %v6322_v55, %v4156_v26  ;;  %v4176_v47 = vsub.f32 %v6367_v45, %v4154_v28 }
 0x4b8   :  { %v4177_v11 = vsub.f32 %v6362_v38, %v4156_v26  ;;  %v4179_v60 = vsub.f32 %v6374_v51, %v4155_v18  ;;  %v4180_v8 = vsub.f32 %v6386_v27, %v4154_v28  ;;  %v4181_v1 = vsub.f32 %v6391_v53, %v4156_v26 }
 0x4b9   :  { %v4182_v29 = vsub.f32 %v6405_v42, %v6439_v56  ;;  %v4183_v21 = vsub.f32 %v6399_v50, %v4155_v18  ;;  %v4184_v30 = vsub.f32 %v6412_v61, %v4154_v28  ;;  %v4185_v10 = vsub.f32 %v6395_v54, %v4156_v26 }
 0x4ba   :  { %v4187_v37 = vmul.f32 %v4161_v34, %v4161_v34  ;;  %v4188_v12 = vmul.f32 %v4162_v2, %v4162_v2  ;;  %v4189_v24 = vmul.f32 %v4163_v16, %v4163_v16  ;;  %v4190_v40 = vmul.f32 %v4164_v25, %v4164_v25 }
 0x4bb   :  { %v4191_v19 = vmul.f32 %v4165_v43, %v4165_v43  ;;  %v4192_v14 = vmul.f32 %v4166_v48, %v4166_v48  ;;  %v4193_v15 = vmul.f32 %v4167_v20, %v4167_v20  ;;  %v4194_v55 = vmul.f32 %v4168_v33, %v4168_v33 }
 0x4bc   :  { %v4195_v3 = vmul.f32 %v4169_v7, %v4169_v7  ;;  %v4196_v35 = vmul.f32 %v4170_v17, %v4170_v17  ;;  %v4197_v59 = vmul.f32 %v4171_v46, %v4171_v46  ;;  %v4198_v13 = vmul.f32 %v4172_v36, %v4172_v36 }
 0x4bd   :  { %v4199_v39 = vmul.f32 %v4173_v0, %v4173_v0  ;;  %v4200_v22 = vmul.f32 %v4174_v49, %v4174_v49  ;;  %v4201_v41 = vmul.f32 %v4175_v32, %v4175_v32  ;;  %v4202_v18 = vmul.f32 %v4176_v47, %v4176_v47 }
 0x4be   :  { %v4203_v31 = vmul.f32 %v4177_v11, %v4177_v11  ;;  %v4204_v28 = vmul.f32 %v4178_v62, %v4178_v62  ;;  %v4205_v23 = vmul.f32 %v4179_v60, %v4179_v60  ;;  %v4206_v26 = vmul.f32 %v4180_v8, %v4180_v8 }
 0x4bf   :  { %v4207_v34 = vmul.f32 %v4181_v1, %v4181_v1  ;;  %v4239_v2 = vcombine.low %v4187_v37, %v4188_v12  ;;  %v4240_v16 = vcombine.low %v4189_v24, %v4190_v40  ;;  %v4256_v25 = vcombine.low %v4191_v19, %v4192_v14 }
 0x4c0   :  { %v4257_v43 = vcombine.low %v4193_v15, %v4194_v55  ;;  %v4273_v48 = vcombine.low %v4195_v3, %v4196_v35  ;;  %v4209_v20 = vmul.f32 %v4183_v21, %v4183_v21  ;;  %v4210_v33 = vmul.f32 %v4184_v30, %v4184_v30 }
 0x4c1   :  { %v4211_v7 = vmul.f32 %v4185_v10, %v4185_v10  ;;  %v4274_v17 = vcombine.low %v4197_v59, %v4198_v13  ;;  %v4247_v46 = vrot.slane %v4239_v2, %v5992_v5  ;;  %v4254_v0 = vrot.slane %v4240_v16, %v5992_v5 }
 0x4c2   :  { %v4264_v49 = vrot.slane %v4256_v25, %v5992_v5  ;;  %v4271_v62 = vrot.slane %v4257_v43, %v5992_v5  ;;  %v4281_v32 = vrot.slane %v4273_v48, %v5992_v5  ;;  %v4297_v47 = vcombine.low %v4200_v22, %v4201_v41 }
 0x4c3   :  { %v4288_v36 = vrot.slane %v4274_v17, %v5992_v5  ;;  %v4298_v11 = vcombine.low %v4202_v18, %v4203_v31  ;;  %v4208_v15 = vmul.f32 %v4182_v29, %v4182_v29  ;;  %v4255_v3 = vcombine.low %v4247_v46, %v4254_v0 }
 0x4c4   :  { %v4272_v35 = vcombine.low %v4264_v49, %v4271_v62  ;;  %v4315_v55 = vcombine.low %v4206_v26, %v4207_v34  ;;  %v4314_v13 = vcombine.low %v4204_v28, %v4205_v23  ;;  %v4332_v8 = vcombine.low %v4210_v33, %v4211_v7 }
 0x4c5   :  { %v4289_v60 = vcombine.low %v4281_v32, %v4288_v36  ;;  %v4312_v59 = vrot.slane %v4298_v11, %v5992_v5  ;;  %v4186_v1 = vsub.f32 %v6423_v52, %v6439_v56  ;;  %v4296_v21 = vrot.slane %v4199_v39, %v5992_v5 }
 0x4c6   :  { %v4363_v30 = vsel %vm4115_vm8, %v4255_v3, 0.0  ;;  %v4305_v10 = vrot.slane %v4297_v47, %v5992_v5  ;;  %v4329_v41 = vrot.slane %v4315_v55, %v5992_v5  ;;  %v4331_v31 = vcombine.low %v4208_v15, %v4209_v20  ;;  %v3989_v47 = vld [vmem:[%s6683_s8] sm:$0x1] }
 0x4c7   :  { %v4364_v22 = vsel %vm4115_vm8, %v4272_v35, 0.0  ;;  %v4322_v12 = vrot.slane %v4314_v13, %v5992_v5  ;;  %v4346_v23 = vrot.slane %v4332_v8, %v5992_v5  ;;  %v4366_v24 = vsel %vm4115_vm8, %v4289_v60, 0.0  ;;  %v3990_v3 = vld [vmem:[%s6684_s9] sm:$0x1] }
 0x4c8   :  { %v4365_v29 = vadd.f32 %v4364_v22, %v4363_v30  ;;  %v4313_v37 = vcombine.low %v4305_v10, %v4312_v59  ;;  %v4212_v40 = vmul.f32 %v4186_v1, %v4186_v1  ;;  %v4339_v19 = vrot.slane %v4331_v31, %v5992_v5 }
 0x4c9   :  { %v4330_v39 = vcombine.low %v4322_v12, %v4329_v41  ;;  %v4368_v14 = vsel %vm4121_vm9, %v4296_v21, 0.0 }
 0x4ca   :  { %v4367_v56 = vadd.f32 %v4366_v24, %v4365_v29  ;;  %v4347_v28 = vcombine.low %v4339_v19, %v4346_v23  ;;  %v4370_v26 = vsel %vm4115_vm8, %v4313_v37, 0.0  ;;  %v4354_v2 = vrot.slane %v4212_v40, %v5992_v5 }
 0x4cb   :  { %v4372_v16 = vsel %vm4115_vm8, %v4330_v39, 0.0 }
 0x4cc   :  { %v4369_v18 = vadd.f32 %v4368_v14, %v4367_v56  ;;  %v4374_v43 = vsel %vm4115_vm8, %v4347_v28, 0.0  ;;  %v4376_v20 = vsel %vm4121_vm9, %v4354_v2, 0.0 }
 0x4ce   :  { %v4371_v34 = vadd.f32 %v4370_v26, %v4369_v18 }
 0x4d0   :  { %v4373_v25 = vadd.f32 %v4372_v16, %v4371_v34 }
 0x4d2   :  { %v4375_v48 = vadd.f32 %v4374_v43, %v4373_v25 }
 0x4d4   :  { %v4377_v33 = vadd.f32 %v4376_v20, %v4375_v48 }
 0x4d6   :  { %v4378_v7 = vrot.slane %v4377_v33, 4 }
 0x4d8   :  { %v4379_v17 = vadd.f32 %v4378_v7, %v4377_v33 }
 0x4da   :  { %v4380_v46 = vrot.slane %v4379_v17, 2 }
 0x4dc   :  { %v4381_v0 = vadd.f32 %v4380_v46, %v4379_v17 }
 0x4de   :  { %v4382_v49 = vrot.slane %v4381_v0, 1 }
 0x4e0   :  { %v4383_v62 = vadd.f32 %v4382_v49, %v4381_v0 }
 0x4e2   :  { %v4384_v32 = vmul.f32 0.01923077, %v4383_v62 }
 0x4e4   :  { %v4385_v36 = vadd.f32 1e-05, %v4384_v32 }
 0x4e6   :  { %4977 = vrsqrt.f32 %v4385_v36 }
 0x4f0   :  { %v4978_v11 = vpop.eup %4977 }
 0x4f1   :  { %v4387_v15 = vmul.f32 %v4978_v11, %v3989_v47  ;;  %v6822_v47 = vld [vmem:[#allocation32_spill] sm:$0xff] }
 0x4f3   :  { %v4388_v35 = vmul.f32 %v4387_v15, %v6433_v9  ;;  %v4394_v55 = vrot.slane %v4387_v15, %v5852_v44 }
 0x4f5   :  { %v4389_v60 = vsub.f32 %v3990_v3, %v4388_v35  ;;  %v4395_v59 = vcombine.high %v4394_v55, %v4394_v55  ;;  %v6509_v13 = vrot.slane %v4394_v55, %v5992_v5 }
 0x4f7   :  { %v6512_v8 = vrot.slane %v4395_v59, %v5992_v5  ;;  %v6516_v1 = vcombine.high %v6509_v13, %v6509_v13  ;;  %v4433_v21 = vmul.f32 %v6509_v13, %v6378_v58  ;;  %v4437_v9 = vmul.f32 %v6509_v13, %v6405_v42 }
 0x4f8   :  { %v4446_v30 = vrot.slane %v4389_v60, %v5852_v44  ;;  %v4429_v10 = vmul.f32 %v6509_v13, %v6344_v6  ;;  %v4441_v41 = vmul.f32 %v6509_v13, %v6423_v52  ;;  %v6537_v42 = vmul.f32 %v6509_v13, %v6298_v4 }
 0x4f9   :  { %v6529_v31 = vcombine.high %v6512_v8, %v6512_v8  ;;  %v4434_v22 = vmul.f32 %v6516_v1, %v6374_v51  ;;  %v4435_v58 = vmul.f32 %v6512_v8, %v6386_v27  ;;  %v4438_v44 = vmul.f32 %v6516_v1, %v6399_v50 }
 0x4fa   :  { %v4439_v6 = vmul.f32 %v6512_v8, %v6412_v61  ;;  %v4447_v52 = vcombine.high %v4446_v30, %v4446_v30  ;;  %v6544_v29 = vrot.slane %v4446_v30, %v5992_v5  ;;  %v4430_v4 = vmul.f32 %v6516_v1, %v6340_v57 }
 0x4fb   :  { %v4436_v51 = vmul.f32 %v6529_v31, %v6391_v53  ;;  %v4440_v27 = vmul.f32 %v6529_v31, %v6395_v54  ;;  %v4431_v37 = vmul.f32 %v6512_v8, %v6367_v45  ;;  %v4432_v54 = vmul.f32 %v6529_v31, %v6362_v38 }
 0x4fc   :  { %v6555_v50 = vrot.slane %v4447_v52, %v5992_v5  ;;  %v6559_v61 = vcombine.high %v6544_v29, %v6544_v29  ;;  %v4485_v12 = vadd.f32 %v6544_v29, %v4433_v21  ;;  %v4489_v53 = vadd.f32 %v6544_v29, %v4437_v9  ;;  %v6823_v9 = vld [vmem:[#allocation31_spill] sm:$0xff] }
 0x4fd   :  { %v4481_v23 = vadd.f32 %v6544_v29, %v4429_v10  ;;  %v4493_v57 = vadd.f32 %v6544_v29, %v4441_v41  ;;  %v4417_v45 = vmul.f32 %v6516_v1, %v6315_v63  ;;  %v4418_v11 = vmul.f32 %v6512_v8, %v6822_v47 }
 0x4fe   :  { %v6571_v24 = vcombine.high %v6555_v50, %v6555_v50  ;;  %v4486_v56 = vadd.f32 %v6559_v61, %v4434_v22  ;;  %v4487_v40 = vadd.f32 %v6555_v50, %v4435_v58  ;;  %v4490_v39 = vadd.f32 %v6559_v61, %v4438_v44  ;;  %v6824_v22 = vld [vmem:[#allocation33_spill] sm:$0xff]  ;;  %v6825_v44 = vld [vmem:[#allocation15_spill] sm:$0xff] }
 0x4ff   :  { %v4491_v19 = vadd.f32 %v6555_v50, %v4439_v6  ;;  %v4511_v38 = vmax.f32 %v4485_v12, 0.0  ;;  %v4515_v14 = vmax.f32 %v4489_v53, 0.0  ;;  %v4482_v18 = vadd.f32 %v6559_v61, %v4430_v4 }
 0x500   :  { %v4488_v28 = vadd.f32 %v6571_v24, %v4436_v51  ;;  %v4492_v63 = vadd.f32 %v6571_v24, %v4440_v27  ;;  %v4512_v26 = vmax.f32 %v4486_v56, 0.0  ;;  %v4513_v34 = vmax.f32 %v4487_v40, 0.0  ;;  %v6826_v27 = vld [vmem:[#allocation10_spill] sm:$0xff]  ;;  %v6830_v40 = vld [vmem:[#allocation20_spill] sm:$0xff] }
 0x501   :  { %v4516_v2 = vmax.f32 %v4490_v39, 0.0  ;;  %v4517_v16 = vmax.f32 %v4491_v19, 0.0  ;;  %v4483_v25 = vadd.f32 %v6555_v50, %v4431_v37  ;;  %v4484_v43 = vadd.f32 %v6571_v24, %v4432_v54  ;;  %v6827_v37 = vld [vmem:[#allocation12_spill] sm:$0xff]  ;;  %v6828_v54 = vld [vmem:[#allocation26_spill] sm:$0xff] }
 0x502   :  { %v4514_v48 = vmax.f32 %v4488_v28, 0.0  ;;  %v4518_v20 = vmax.f32 %v4492_v63, 0.0  ;;  %v4621_v33 = vcombine.low %v4511_v38, %v4512_v26  ;;  %v4507_v7 = vmax.f32 %v4481_v23, 0.0  ;;  %v6832_v28 = vld [vmem:[#allocation29_spill] sm:$0xff] }
 0x503   :  { %v4638_v17 = vcombine.low %v4515_v14, %v4516_v2  ;;  %v4508_v46 = vmax.f32 %v4482_v18, 0.0  ;;  %v4509_v0 = vmax.f32 %v4483_v25, 0.0  ;;  %v4510_v49 = vmax.f32 %v4484_v43, 0.0  ;;  %v6831_v14 = vld [vmem:[#allocation30_spill] sm:$0xff] }
 0x504   :  { %v4622_v62 = vcombine.low %v4513_v34, %v4514_v48  ;;  %v4639_v32 = vcombine.low %v4517_v16, %v4518_v20  ;;  %v4519_v36 = vmax.f32 %v4493_v57, 0.0  ;;  %v4629_v15 = vrot.slane %v4621_v33, %v5992_v5  ;;  %v6829_v57 = vld [vmem:[#allocation28_spill] sm:$0xff] }
 0x505   :  { %v4646_v3 = vrot.slane %v4638_v17, %v5992_v5  ;;  %v4604_v35 = vcombine.low %v4507_v7, %v4508_v46  ;;  %v4605_v55 = vcombine.low %v4509_v0, %v4510_v49  ;;  %v4419_v30 = vmul.f32 %v6529_v31, %v6823_v9 }
 0x506   :  { %v4636_v60 = vrot.slane %v4622_v62, %v5992_v5  ;;  %v4653_v59 = vrot.slane %v4639_v32, %v5992_v5  ;;  %v4661_v21 = vrot.slane %v4519_v36, %v5992_v5  ;;  %v4420_v58 = vmul.f32 %v6509_v13, %v6824_v22 }
 0x507   :  { %v4612_v10 = vrot.slane %v4604_v35, %v5992_v5  ;;  %v4619_v41 = vrot.slane %v4605_v55, %v5992_v5  ;;  %v4421_v6 = vmul.f32 %v6516_v1, %v6825_v44  ;;  %v4422_v4 = vmul.f32 %v6512_v8, %v6826_v27 }
 0x508   :  { %v4637_v52 = vcombine.low %v4629_v15, %v4636_v60  ;;  %v4654_v51 = vcombine.low %v4646_v3, %v4653_v59  ;;  %v4423_v12 = vmul.f32 %v6529_v31, %v6827_v37  ;;  %v4424_v23 = vmul.f32 %v6509_v13, %v6828_v54 }
 0x509   :  { %v4620_v53 = vcombine.low %v4612_v10, %v4619_v41  ;;  %v4425_v56 = vmul.f32 %v6516_v1, %v6829_v57  ;;  %v4426_v39 = vmul.f32 %v6512_v8, %v6830_v40  ;;  %v4427_v18 = vmul.f32 %v6529_v31, %v6831_v14 }
 0x50a   :  { %v4684_v19 = vsel %vm4115_vm8, %v4637_v52, 0.0  ;;  %v4686_v38 = vsel %vm4115_vm8, %v4654_v51, 0.0  ;;  %v4428_v63 = vmul.f32 %v6509_v13, %v6832_v28  ;;  %v4468_v34 = vadd.f32 %v6544_v29, %v6537_v42 }
 0x50b   :  { %v4683_v26 = vsel %vm4115_vm8, %v4620_v53, 0.0  ;;  %v4469_v1 = vadd.f32 %v6559_v61, %v4417_v45  ;;  %v4470_v2 = vadd.f32 %v6555_v50, %v4418_v11  ;;  %v4471_v16 = vadd.f32 %v6571_v24, %v4419_v30 }
 0x50c   :  { %v4685_v8 = vadd.f32 %v4684_v19, %v4683_v26  ;;  %v4472_v25 = vadd.f32 %v6544_v29, %v4420_v58  ;;  %v4473_v43 = vadd.f32 %v6559_v61, %v4421_v6  ;;  %v4474_v31 = vadd.f32 %v6555_v50, %v4422_v4 }
 0x50d   :  { %v4475_v13 = vadd.f32 %v6571_v24, %v4423_v12  ;;  %v4476_v48 = vadd.f32 %v6544_v29, %v4424_v23  ;;  %v4477_v20 = vadd.f32 %v6559_v61, %v4425_v56  ;;  %v4688_v45 = vsel %vm4121_vm9, %v4661_v21, 0.0 }
 0x50e   :  { %v4687_v42 = vadd.f32 %v4686_v38, %v4685_v8  ;;  %v4478_v33 = vadd.f32 %v6555_v50, %v4426_v39  ;;  %v4479_v7 = vadd.f32 %v6571_v24, %v4427_v18  ;;  %v4480_v17 = vadd.f32 %v6544_v29, %v4428_v63  ;;  %v4727_v8 = vld [vmem:[%s6685_s10 + $0x8] sm:$0xff] }
 0x50f   :  { %v4494_v46 = vmax.f32 %v4468_v34, 0.0  ;;  %v4495_v0 = vmax.f32 %v4469_v1, 0.0  ;;  %v4497_v49 = vmax.f32 %v4471_v16, 0.0  ;;  %v4496_v32 = vmax.f32 %v4470_v2, 0.0  ;;  %v4726_v16 = vld [vmem:[%s6685_s10] sm:$0xff] }
 0x510   :  { %v4689_v62 = vadd.f32 %v4688_v45, %v4687_v42  ;;  %v4498_v36 = vmax.f32 %v4472_v25, 0.0  ;;  %v4499_v47 = vmax.f32 %v4473_v43, 0.0  ;;  %v4500_v11 = vmax.f32 %v4474_v31, 0.0  ;;  %v4728_v42 = vld [vmem:[%s6685_s10 + $0x10] sm:$0xff] }
 0x511   :  { %v4501_v15 = vmax.f32 %v4475_v13, 0.0  ;;  %v4502_v3 = vmax.f32 %v4476_v48, 0.0  ;;  %v4503_v61 = vmax.f32 %v4477_v20, 0.0  ;;  %v4504_v55 = vmax.f32 %v4478_v33, 0.0 }
 0x512   :  { %v4690_v35 = vrot.slane %v4689_v62, 4  ;;  %v4505_v60 = vmax.f32 %v4479_v7, 0.0  ;;  %v4546_v59 = vcombine.low %v4494_v46, %v4495_v0  ;;  %v4547_v50 = vcombine.low %v4496_v32, %v4497_v49  ;;  %v4729_v32 = vld [vmem:[%s6685_s10 + $0x18] sm:$0xff] }
 0x513   :  { %v4563_v21 = vcombine.low %v4498_v36, %v4499_v47  ;;  %v4564_v24 = vcombine.low %v4500_v11, %v4501_v15  ;;  %v4580_v9 = vcombine.low %v4502_v3, %v4503_v61  ;;  %v4506_v30 = vmax.f32 %v4480_v17, 0.0 }
 0x514   :  { %v4691_v29 = vadd.f32 %v4690_v35, %v4689_v62  ;;  %v4581_v10 = vcombine.low %v4504_v55, %v4505_v60  ;;  %v4554_v41 = vrot.slane %v4546_v59, %v5992_v5  ;;  %v4561_v22 = vrot.slane %v4547_v50, %v5992_v5 }
 0x515   :  { %v4571_v58 = vrot.slane %v4563_v21, %v5992_v5  ;;  %v4578_v44 = vrot.slane %v4564_v24, %v5992_v5  ;;  %v4588_v52 = vrot.slane %v4580_v9, %v5992_v5  ;;  %v4603_v53 = vrot.slane %v4506_v30, %v5992_v5 }
 0x516   :  { %v4692_v6 = vrot.slane %v4691_v29, 2  ;;  %v4595_v51 = vrot.slane %v4581_v10, %v5992_v5  ;;  %v4562_v27 = vcombine.low %v4554_v41, %v4561_v22 }
 0x517   :  { %v4579_v4 = vcombine.low %v4571_v58, %v4578_v44  ;;  %v4675_v38 = vsel %vm4121_vm9, %v4603_v53, 0.0 }
 0x518   :  { %v4693_v37 = vadd.f32 %v4692_v6, %v4691_v29  ;;  %v4596_v12 = vcombine.low %v4588_v52, %v4595_v51  ;;  %v4670_v54 = vsel %vm4115_vm8, %v4562_v27, 0.0 }
 0x519   :  { %v4671_v23 = vsel %vm4115_vm8, %v4579_v4, 0.0 }
 0x51a   :  { %v4694_v57 = vrot.slane %v4693_v37, 1  ;;  %v4672_v56 = vadd.f32 %v4671_v23, %v4670_v54  ;;  %v4673_v40 = vsel %vm4115_vm8, %v4596_v12, 0.0 }
 0x51c   :  { %v4695_v39 = vadd.f32 %v4694_v57, %v4693_v37  ;;  %v4674_v19 = vadd.f32 %v4673_v40, %v4672_v56  ;;  %v4866_v37 = vld [vmem:[%s6686_s11] ss:$0 sm:$0xff] }
 0x51e   :  { %4716 = vbcast.lane.b32.xlu1 %v4695_v39, 264  ;;  %4712 = vbcast.lane.b32.xlu0 %v4695_v39, 256  ;;  %v4676_v14 = vadd.f32 %v4675_v38, %v4674_v19 }
 0x520   :  { %v4677_v18 = vrot.slane %v4676_v14, 4 }
 0x522   :  { %v4678_v28 = vadd.f32 %v4677_v18, %v4676_v14 }
 0x524   :  { %v4679_v63 = vrot.slane %v4678_v28, 2 }
 0x526   :  { %v4680_v26 = vadd.f32 %v4679_v63, %v4678_v28 }
 0x528   :  { %v4681_v5 = vrot.slane %v4680_v26, 1 }
 0x52a   :  { %v4682_v34 = vadd.f32 %v4681_v5, %v4680_v26 }
 0x52c   :  { %4701 = vbcast.lane.b32.xlu1 %v4682_v34, 264  ;;  %4697 = vbcast.lane.b32.xlu0 %v4682_v34, 256 }
 0x530   :  { %4705 = vbcast.lane.b32.xlu1 %v4682_v34, 272  ;;  %4720 = vbcast.lane.b32.xlu0 %v4695_v39, 272 }
 0x534   :  { %4709 = vbcast.lane.b32.xlu1 %v4682_v34, 280  ;;  %4724 = vbcast.lane.b32.xlu0 %v4695_v39, 280 }
 0x590   :  { %v4717_v1 = vpop.permute.xlu1 %4716  ;;  %v4713_v2 = vpop.permute.xlu0 %4712 }
 0x591   :  { %v4735_v25 = vmul.f32 %v4727_v8, %v4717_v1  ;;  %v4734_v43 = vmul.f32 %v4726_v16, %v4713_v2 }
 0x593   :  { %v4753_v45 = vsel %vm4738_vm10, %v4735_v25, 0.0  ;;  %v4752_v33 = vsel %vm4738_vm10, %v4734_v43, 0.0 }
 0x594   :  { %v4754_v11 = vadd.f32 %v4753_v45, %v4752_v33 }
 0x59e   :  { %v4702_v31 = vpop.permute.xlu1 %4701  ;;  %v4698_v13 = vpop.permute.xlu0 %4697 }
 0x59f   :  { %v4731_v48 = vmul.f32 %v4727_v8, %v4702_v31  ;;  %v4730_v20 = vmul.f32 %v4726_v16, %v4698_v13 }
 0x5a1   :  { %v4740_v46 = vsel %vm4738_vm10, %v4731_v48, 0.0  ;;  %v4739_v0 = vsel %vm4738_vm10, %v4730_v20, 0.0 }
 0x5a2   :  { %v4706_v7 = vpop.permute.xlu1 %4705  ;;  %v4721_v17 = vpop.permute.xlu0 %4720  ;;  %v4741_v15 = vadd.f32 %v4740_v46, %v4739_v0 }
 0x5a3   :  { %v4732_v49 = vmul.f32 %v4728_v42, %v4706_v7  ;;  %v4736_v62 = vmul.f32 %v4728_v42, %v4721_v17 }
 0x5a5   :  { %v4742_v36 = vsel %vm4738_vm10, %v4732_v49, 0.0  ;;  %v4755_v47 = vsel %vm4738_vm10, %v4736_v62, 0.0 }
 0x5a6   :  { %v4710_v3 = vpop.permute.xlu1 %4709  ;;  %v4725_v61 = vpop.permute.xlu0 %4724  ;;  %v4743_v60 = vadd.f32 %v4742_v36, %v4741_v15  ;;  %v4756_v59 = vadd.f32 %v4755_v47, %v4754_v11 }
 0x5a7   :  { %v4733_v35 = vmul.f32 %v4729_v32, %v4710_v3  ;;  %v4737_v55 = vmul.f32 %v4729_v32, %v4725_v61 }
 0x5a9   :  { %v4744_v50 = vsel %vm4738_vm10, %v4733_v35, 0.0  ;;  %v4757_v21 = vsel %vm4738_vm10, %v4737_v55, 0.0 }
 0x5aa   :  { %v4745_v24 = vadd.f32 %v4744_v50, %v4743_v60  ;;  %v4758_v9 = vadd.f32 %v4757_v21, %v4756_v59 }
 0x5ac   :  { %v4746_v29 = vrot.slane %v4745_v24, 4  ;;  %v4759_v30 = vrot.slane %v4758_v9, 4 }
 0x5ae   :  { %v4747_v10 = vadd.f32 %v4746_v29, %v4745_v24  ;;  %v4760_v41 = vadd.f32 %v4759_v30, %v4758_v9 }
 0x5b0   :  { %v4748_v22 = vrot.slane %v4747_v10, 2  ;;  %v4761_v58 = vrot.slane %v4760_v41, 2 }
 0x5b2   :  { %v4749_v44 = vadd.f32 %v4748_v22, %v4747_v10  ;;  %v4762_v6 = vadd.f32 %v4761_v58, %v4760_v41 }
 0x5b4   :  { %v4750_v52 = vrot.slane %v4749_v44, 1  ;;  %v4763_v51 = vrot.slane %v4762_v6, 1 }
 0x5b6   :  { %v4751_v27 = vadd.f32 %v4750_v52, %v4749_v44  ;;  %v4764_v4 = vadd.f32 %v4763_v51, %v4762_v6 }
 0x5b8   :  { %v4765_v12 = vmul.f32 0.03846154, %v4751_v27  ;;  %v4766_v53 = vmul.f32 0.03846154, %v4764_v4 }
 0x5ba   :  { %v4775_v54 = vadd.f32 %v4866_v37, %v4766_v53  ;;  %v4774_v23 = vadd.f32 %v4866_v37, %v4765_v12 }
 0x5bc   :  { %v4778_v57 = vrot.slane %v4775_v54, 7 }
 0x5be   :  { %v4780_v56 = vsel %vm4779_vm11, %v4778_v57, %v4774_v23 }
 0x5bf   :  { %4783 = vst.msk [vmem:[#allocation2] sm:$0x3] %vm4782_vm12, %v4780_v56 }
 0x5c0   :  { %4990 = shalt.err (!%p4987_p4)
}
 0x5c1   :  { %s4991_s13 = scalar_lea.hbm %s6687_s12, 32 }
 0x5c2   :  { %p4992_p5 = scmp.ne.s32.totalorder %s6687_s12, %s4991_s13  ;;  %p4995_p6 = scmp.lt.u32.totalorder %s4991_s13, %s6687_s12 }
 0x5c4   :  { %p4997_p7 = pnand %p4995_p6, %p4992_p5 }
 0x5c6   :  { %5000 = shalt.err (!%p4997_p7)
}
 0x5c7   :  { %4793 = dma.vmem_to_hbm [thread:$0]  %s4791_s3, 32, %s6687_s12, [#allocation3]  }
 0x5c8   :  { %5001 = dma.done.wait [#allocation3], 32  }
 0x5c9   :  { %5002 = vsyncadd [#allocation3], 4294967264 }
 0x5ca   :  { %4797 = vsyncpa [#allocation3], 1 }

</bundles_post_ra>
